<compile_context>
chip_gen: v5e
topology: v5e:2x2
jax: 0.10.0
libtpu: 0.0.40
codegen_flags: <defaults>
</compile_context>

<pallas_src>
import functools

import jax
import jax.numpy as jnp
import numpy as np
from jax.experimental import pallas as pl
from jax.experimental.pallas import tpu as pltpu

_EPS = 1e-5  # PyTorch BatchNorm2d default


def _make_resblock_kernel(W, mxu_dt):
    """Kernel factory closing over the static row width W and the MXU operand dtype."""
    taps = [(dh, dw) for dh in (-1, 0, 1) for dw in (-1, 0, 1)]

    def kernel(x_ref, m_ref, w3_ref, g1_ref, be1_ref, w1_ref, g2_ref, be2_ref, o_ref):
        C, NHW = x_ref.shape
        inv = 1.0 / float(NHW)

        x = x_ref[...]                          # (C, NHW) f32, lane-dense
        r = jnp.maximum(x, 0.0)                 # ReLU #1

        # --- Conv3x3(pad=1), transposed: 9 accumulating (C,C)@(C,NHW) MXU matmuls.
        # Each tap's patch is a lane-roll of r (XLU slot); the conv's zero padding is
        # realized by per-tap boundary masks (compile-time constants, passed in).
        acc = None
        for t, (dh, dw) in enumerate(taps):
            d = dh * W + dw
            if d != 0:
                p = pltpu.roll(r, (-d) % NHW, axis=1) * m_ref[t]   # (C,NHW) * (1,NHW)
            else:
                p = r
            contrib = jnp.dot(w3_ref[t], p.astype(mxu_dt),
                              preferred_element_type=jnp.float32)   # (C, NHW) f32
            acc = contrib if acc is None else acc + contrib
        # conv bias b1 omitted: exactly cancelled by BN1's mean subtraction.

        # --- BatchNorm #1 (two-pass, centered variance) fused with ReLU #2.
        mu1 = jnp.sum(acc, axis=1, keepdims=True) * inv             # (C,1) lane reduction
        yc = acc - mu1
        var1 = jnp.sum(yc * yc, axis=1, keepdims=True) * inv
        s1 = g1_ref[...] * jax.lax.rsqrt(var1 + _EPS)               # (C,1)
        h1 = jnp.maximum(yc * s1 + be1_ref[...], 0.0)               # (C,NHW) f32

        # --- Conv1x1, transposed (bias b2 omitted: cancelled by BN2).
        z = jnp.dot(w1_ref[...], h1.astype(mxu_dt),
                    preferred_element_type=jnp.float32)             # (C,NHW) f32

        # --- BatchNorm #2 folded into the residual store.
        mu2 = jnp.sum(z, axis=1, keepdims=True) * inv
        zc = z - mu2
        var2 = jnp.sum(zc * zc, axis=1, keepdims=True) * inv
        s2 = g2_ref[...] * jax.lax.rsqrt(var2 + _EPS)
        o_ref[...] = (x + zc * s2 + be2_ref[...]).astype(o_ref.dtype)
        # TODO(synk): BatchNorm running-stat (momentum buffer) updates are stateful
        # training side effects and are not modeled; the forward output is unaffected.

    return kernel


@functools.lru_cache(maxsize=None)
def _conv_pad_masks(N, H, W):
    """Per-tap validity masks (1 inside, 0 where the tap falls in the conv zero-padding),
    laid out on the flattened (n, h, w) lane axis.  Shape (9, 1, N*H*W), float32."""
    hh = np.arange(H).reshape(H, 1)
    ww = np.arange(W).reshape(1, W)
    out = np.empty((9, 1, N * H * W), np.float32)
    t = 0
    for dh in (-1, 0, 1):
        for dw in (-1, 0, 1):
            ok = ((hh + dh >= 0) & (hh + dh < H) & (ww + dw >= 0) & (ww + dw < W))
            out[t, 0] = np.tile(ok.reshape(-1).astype(np.float32), N)
            t += 1
    return jnp.asarray(out)


def prepare_resblock_params(params, *, mxu_dtype=jnp.bfloat16):
    """One-time weight re-layout, hoisted out of the per-call forward path."""
    C = params["g1"].shape[0]
    return {
        # (Cout, Cin, 3, 3) -> (tap = kh*3+kw, Cout, Cin): each tap is a ready MXU LHS.
        "w3s": jnp.transpose(params["w3"], (2, 3, 0, 1)).reshape(9, C, C).astype(mxu_dtype),
        "w1m": params["w1"][:, :, 0, 0].astype(mxu_dtype),          # (Cout, Cin)
        "g1":  params["g1"].reshape(C, 1).astype(jnp.float32),
        "be1": params["be1"].reshape(C, 1).astype(jnp.float32),
        "g2":  params["g2"].reshape(C, 1).astype(jnp.float32),
        "be2": params["be2"].reshape(C, 1).astype(jnp.float32),
        "mxu_dtype": mxu_dtype,
        # b1 / b2 intentionally dropped: exact no-ops under training-mode BatchNorm.
    }


def _full_spec(shape):
    return pl.BlockSpec(shape, lambda i: (0,) * len(shape))


def resblock_forward(x_nchw, prep):
    """Pallas ResBlock forward.  x_nchw: (N, C, H, W) float32 (public PyTorch layout)."""
    N, C, H, W = x_nchw.shape
    NHW = N * H * W
    mxu_dtype = prep["mxu_dtype"]

    # Channel-major, lane-dense layout: last dim NHW (a multiple of 128 here) sits on lanes.
    # TODO(synk): these two transposes exist only to preserve the public NCHW (PyTorch)
    # interface; keep the surrounding model channel-major to drop them entirely.
    x_cm = jnp.transpose(x_nchw, (1, 0, 2, 3)).reshape(C, NHW)
    masks = _conv_pad_masks(N, H, W)

    try:
        vmem_cap = pltpu.get_tpu_info().vmem_capacity_bytes
    except Exception:
        vmem_cap = 64 * 1024 * 1024
    vmem_limit = int(min(vmem_cap // 2, 64 * 1024 * 1024))

    out_cm = pl.pallas_call(
        _make_resblock_kernel(W, mxu_dtype),
        out_shape=jax.ShapeDtypeStruct((C, NHW), x_nchw.dtype),
        grid=(1,),
        in_specs=[
            _full_spec((C, NHW)),      # x (residual + ReLU input), lane-dense
            _full_spec((9, 1, NHW)),   # conv boundary masks
            _full_spec((9, C, C)),     # 3x3 weights, tap-major
            _full_spec((C, 1)),        # gamma1
            _full_spec((C, 1)),        # beta1
            _full_spec((C, C)),        # 1x1 weights
            _full_spec((C, 1)),        # gamma2
            _full_spec((C, 1)),        # beta2
        ],
        out_specs=_full_spec((C, NHW)),
        compiler_params=pltpu.CompilerParams(
            dimension_semantics=("arbitrary",),
            vmem_limit_bytes=vmem_limit,
        ),
    )(x_cm, masks, prep["w3s"], prep["g1"], prep["be1"],
      prep["w1m"], prep["g2"], prep["be2"])

    return jnp.transpose(out_cm.reshape(C, N, H, W), (1, 0, 2, 3))    # back to NCHW


def resblock_reference(x, p):
    """Pure-JAX reference (NCHW), mirrors the PyTorch training-mode forward (with biases)."""
    eps = _EPS
    r = jnp.maximum(x, 0.0)
    y = jax.lax.conv_general_dilated(
        r, p["w3"], (1, 1), ((1, 1), (1, 1)),
        dimension_numbers=("NCHW", "OIHW", "NCHW"))
    y = y + p["b1"][None, :, None, None]
    mu = jnp.mean(y, axis=(0, 2, 3), keepdims=True)
    var = jnp.mean((y - mu) ** 2, axis=(0, 2, 3), keepdims=True)
    y = (y - mu) / jnp.sqrt(var + eps)
    y = y * p["g1"][None, :, None, None] + p["be1"][None, :, None, None]
    y = jnp.maximum(y, 0.0)
    y = jax.lax.conv_general_dilated(
        y, p["w1"], (1, 1), ((0, 0), (0, 0)),
        dimension_numbers=("NCHW", "OIHW", "NCHW"))
    y = y + p["b2"][None, :, None, None]
    mu = jnp.mean(y, axis=(0, 2, 3), keepdims=True)
    var = jnp.mean((y - mu) ** 2, axis=(0, 2, 3), keepdims=True)
    y = (y - mu) / jnp.sqrt(var + eps)
    y = y * p["g2"][None, :, None, None] + p["be2"][None, :, None, None]
    return x + y


if __name__ == "__main__":
    N, C, H, W = 2, 4, 16, 16
    key = jax.random.PRNGKey(0)
    ks = jax.random.split(key, 9)

    x = jax.random.normal(ks[0], (N, C, H, W), jnp.float32)
    params = {
        "w3":  0.2 * jax.random.normal(ks[1], (C, C, 3, 3), jnp.float32),
        "b1":  0.1 * jax.random.normal(ks[2], (C,), jnp.float32),
        "g1":  1.0 + 0.1 * jax.random.normal(ks[3], (C,), jnp.float32),
        "be1": 0.1 * jax.random.normal(ks[4], (C,), jnp.float32),
        "w1":  0.2 * jax.random.normal(ks[5], (C, C, 1, 1), jnp.float32),
        "b2":  0.1 * jax.random.normal(ks[6], (C,), jnp.float32),
        "g2":  1.0 + 0.1 * jax.random.normal(ks[7], (C,), jnp.float32),
        "be2": 0.1 * jax.random.normal(ks[8], (C,), jnp.float32),
    }

    ref = jax.block_until_ready(resblock_reference(x, params))

    # Default path: bf16 MXU operands, f32 accumulation / f32 elementwise math.
    out_bf16 = jax.block_until_ready(resblock_forward(x, prepare_resblock_params(params)))
    assert out_bf16.shape == (N, C, H, W) and out_bf16.dtype == jnp.float32
    np.testing.assert_allclose(np.asarray(out_bf16), np.asarray(ref), rtol=5e-2, atol=5e-2)

    # f32 MXU operands: exact parity with the f32 reference (tolerance gated on dtype).
    out_f32 = jax.block_until_ready(
        resblock_forward(x, prepare_resblock_params(params, mxu_dtype=jnp.float32)))
    np.testing.assert_allclose(np.asarray(out_f32), np.asarray(ref), rtol=1e-4, atol=1e-4)

    print("KERNEL_OK")
</pallas_src>

<mosaic_0001>
module attributes {stable_mosaic.version = 11 : i64} {
  func.func @kernel(%arg0: i32, %arg1: memref<4x512xf32, #tpu.memory_space<vmem>>, %arg2: memref<9x1x512xf32, #tpu.memory_space<vmem>>, %arg3: memref<9x4x4xbf16, #tpu.memory_space<vmem>>, %arg4: memref<4x1xf32, #tpu.memory_space<vmem>>, %arg5: memref<4x1xf32, #tpu.memory_space<vmem>>, %arg6: memref<4x4xbf16, #tpu.memory_space<vmem>>, %arg7: memref<4x1xf32, #tpu.memory_space<vmem>>, %arg8: memref<4x1xf32, #tpu.memory_space<vmem>>, %arg9: memref<4x512xf32, #tpu.memory_space<vmem>>) attributes {dimension_semantics = [#tpu.dimension_semantics<arbitrary>], iteration_bounds = array<i64: 1>, scalar_prefetch = 0 : i64, scratch_operands = 0 : i64, tpu.core_type = #tpu.core_type<tc>, window_params = [{pipeline_mode = #tpu.pipeline_mode<synchronous>, transform_indices = @transform_0, window_bounds = array<i64: 4, 512>}, {pipeline_mode = #tpu.pipeline_mode<synchronous>, transform_indices = @transform_1, window_bounds = array<i64: 9, 1, 512>}, {pipeline_mode = #tpu.pipeline_mode<synchronous>, transform_indices = @transform_2, window_bounds = array<i64: 9, 4, 4>}, {pipeline_mode = #tpu.pipeline_mode<synchronous>, transform_indices = @transform_3, window_bounds = array<i64: 4, 1>}, {pipeline_mode = #tpu.pipeline_mode<synchronous>, transform_indices = @transform_4, window_bounds = array<i64: 4, 1>}, {pipeline_mode = #tpu.pipeline_mode<synchronous>, transform_indices = @transform_5, window_bounds = array<i64: 4, 4>}, {pipeline_mode = #tpu.pipeline_mode<synchronous>, transform_indices = @transform_6, window_bounds = array<i64: 4, 1>}, {pipeline_mode = #tpu.pipeline_mode<synchronous>, transform_indices = @transform_7, window_bounds = array<i64: 4, 1>}, {pipeline_mode = #tpu.pipeline_mode<synchronous>, transform_indices = @transform_8, window_bounds = array<i64: 4, 512>}]} {
    %c0 = arith.constant 0 : index
    %c0_0 = arith.constant 0 : index
    %0 = vector.load %arg1[%c0, %c0_0] : memref<4x512xf32, #tpu.memory_space<vmem>>, vector<4x512xf32>
    %cst = arith.constant 0.000000e+00 : f32
    %1 = vector.broadcast %cst : f32 to vector<4x512xf32>
    %2 = arith.maximumf %0, %1 : vector<4x512xf32>
    %c17_i32 = arith.constant 17 : i32
    %3 = tpu.dynamic_rotate %2 by %c17_i32 dim 1 : vector<4x512xf32>, i32 -> vector<4x512xf32>
    %c0_1 = arith.constant 0 : index
    %c0_2 = arith.constant 0 : index
    %c0_3 = arith.constant 0 : index
    %4 = vector.load %arg2[%c0_1, %c0_2, %c0_3] : memref<9x1x512xf32, #tpu.memory_space<vmem>>, vector<1x1x512xf32>
    %5 = vector.shape_cast %4 : vector<1x1x512xf32> to vector<1x512xf32>
    %6 = vector.broadcast %5 : vector<1x512xf32> to vector<4x512xf32>
    %7 = arith.mulf %3, %6 : vector<4x512xf32>
    %c0_4 = arith.constant 0 : index
    %c0_5 = arith.constant 0 : index
    %c0_6 = arith.constant 0 : index
    %8 = vector.load %arg3[%c0_4, %c0_5, %c0_6] : memref<9x4x4xbf16, #tpu.memory_space<vmem>>, vector<1x4x4xbf16>
    %9 = vector.shape_cast %8 : vector<1x4x4xbf16> to vector<4x4xbf16>
    %10 = arith.truncf %7 : vector<4x512xf32> to vector<4x512xbf16>
    %cst_7 = arith.constant dense<0.000000e+00> : vector<4x512xf32>
    %11 = tpu.matmul %9, %10, %cst_7 {dimension_numbers = #tpu.dot_dimension_numbers<[1], [0], [0], [1], [0, 0, 1, 1], [], []>} : vector<4x4xbf16>, vector<4x512xbf16>, vector<4x512xf32> -> vector<4x512xf32>
    %c16_i32 = arith.constant 16 : i32
    %12 = tpu.dynamic_rotate %2 by %c16_i32 dim 1 : vector<4x512xf32>, i32 -> vector<4x512xf32>
    %c1 = arith.constant 1 : index
    %c0_8 = arith.constant 0 : index
    %c0_9 = arith.constant 0 : index
    %13 = vector.load %arg2[%c1, %c0_8, %c0_9] : memref<9x1x512xf32, #tpu.memory_space<vmem>>, vector<1x1x512xf32>
    %14 = vector.shape_cast %13 : vector<1x1x512xf32> to vector<1x512xf32>
    %15 = vector.broadcast %14 : vector<1x512xf32> to vector<4x512xf32>
    %16 = arith.mulf %12, %15 : vector<4x512xf32>
    %c1_10 = arith.constant 1 : index
    %c0_11 = arith.constant 0 : index
    %c0_12 = arith.constant 0 : index
    %17 = vector.load %arg3[%c1_10, %c0_11, %c0_12] : memref<9x4x4xbf16, #tpu.memory_space<vmem>>, vector<1x4x4xbf16>
    %18 = vector.shape_cast %17 : vector<1x4x4xbf16> to vector<4x4xbf16>
    %19 = arith.truncf %16 : vector<4x512xf32> to vector<4x512xbf16>
    %cst_13 = arith.constant dense<0.000000e+00> : vector<4x512xf32>
    %20 = tpu.matmul %18, %19, %cst_13 {dimension_numbers = #tpu.dot_dimension_numbers<[1], [0], [0], [1], [0, 0, 1, 1], [], []>} : vector<4x4xbf16>, vector<4x512xbf16>, vector<4x512xf32> -> vector<4x512xf32>
    %21 = arith.addf %11, %20 : vector<4x512xf32>
    %c15_i32 = arith.constant 15 : i32
    %22 = tpu.dynamic_rotate %2 by %c15_i32 dim 1 : vector<4x512xf32>, i32 -> vector<4x512xf32>
    %c2 = arith.constant 2 : index
    %c0_14 = arith.constant 0 : index
    %c0_15 = arith.constant 0 : index
    %23 = vector.load %arg2[%c2, %c0_14, %c0_15] : memref<9x1x512xf32, #tpu.memory_space<vmem>>, vector<1x1x512xf32>
    %24 = vector.shape_cast %23 : vector<1x1x512xf32> to vector<1x512xf32>
    %25 = vector.broadcast %24 : vector<1x512xf32> to vector<4x512xf32>
    %26 = arith.mulf %22, %25 : vector<4x512xf32>
    %c2_16 = arith.constant 2 : index
    %c0_17 = arith.constant 0 : index
    %c0_18 = arith.constant 0 : index
    %27 = vector.load %arg3[%c2_16, %c0_17, %c0_18] : memref<9x4x4xbf16, #tpu.memory_space<vmem>>, vector<1x4x4xbf16>
    %28 = vector.shape_cast %27 : vector<1x4x4xbf16> to vector<4x4xbf16>
    %29 = arith.truncf %26 : vector<4x512xf32> to vector<4x512xbf16>
    %cst_19 = arith.constant dense<0.000000e+00> : vector<4x512xf32>
    %30 = tpu.matmul %28, %29, %cst_19 {dimension_numbers = #tpu.dot_dimension_numbers<[1], [0], [0], [1], [0, 0, 1, 1], [], []>} : vector<4x4xbf16>, vector<4x512xbf16>, vector<4x512xf32> -> vector<4x512xf32>
    %31 = arith.addf %21, %30 : vector<4x512xf32>
    %c1_i32 = arith.constant 1 : i32
    %32 = tpu.dynamic_rotate %2 by %c1_i32 dim 1 : vector<4x512xf32>, i32 -> vector<4x512xf32>
    %c3 = arith.constant 3 : index
    %c0_20 = arith.constant 0 : index
    %c0_21 = arith.constant 0 : index
    %33 = vector.load %arg2[%c3, %c0_20, %c0_21] : memref<9x1x512xf32, #tpu.memory_space<vmem>>, vector<1x1x512xf32>
    %34 = vector.shape_cast %33 : vector<1x1x512xf32> to vector<1x512xf32>
    %35 = vector.broadcast %34 : vector<1x512xf32> to vector<4x512xf32>
    %36 = arith.mulf %32, %35 : vector<4x512xf32>
    %c3_22 = arith.constant 3 : index
    %c0_23 = arith.constant 0 : index
    %c0_24 = arith.constant 0 : index
    %37 = vector.load %arg3[%c3_22, %c0_23, %c0_24] : memref<9x4x4xbf16, #tpu.memory_space<vmem>>, vector<1x4x4xbf16>
    %38 = vector.shape_cast %37 : vector<1x4x4xbf16> to vector<4x4xbf16>
    %39 = arith.truncf %36 : vector<4x512xf32> to vector<4x512xbf16>
    %cst_25 = arith.constant dense<0.000000e+00> : vector<4x512xf32>
    %40 = tpu.matmul %38, %39, %cst_25 {dimension_numbers = #tpu.dot_dimension_numbers<[1], [0], [0], [1], [0, 0, 1, 1], [], []>} : vector<4x4xbf16>, vector<4x512xbf16>, vector<4x512xf32> -> vector<4x512xf32>
    %41 = arith.addf %31, %40 : vector<4x512xf32>
    %c4 = arith.constant 4 : index
    %c0_26 = arith.constant 0 : index
    %c0_27 = arith.constant 0 : index
    %42 = vector.load %arg3[%c4, %c0_26, %c0_27] : memref<9x4x4xbf16, #tpu.memory_space<vmem>>, vector<1x4x4xbf16>
    %43 = vector.shape_cast %42 : vector<1x4x4xbf16> to vector<4x4xbf16>
    %44 = arith.truncf %2 : vector<4x512xf32> to vector<4x512xbf16>
    %cst_28 = arith.constant dense<0.000000e+00> : vector<4x512xf32>
    %45 = tpu.matmul %43, %44, %cst_28 {dimension_numbers = #tpu.dot_dimension_numbers<[1], [0], [0], [1], [0, 0, 1, 1], [], []>} : vector<4x4xbf16>, vector<4x512xbf16>, vector<4x512xf32> -> vector<4x512xf32>
    %46 = arith.addf %41, %45 : vector<4x512xf32>
    %c511_i32 = arith.constant 511 : i32
    %47 = tpu.dynamic_rotate %2 by %c511_i32 dim 1 : vector<4x512xf32>, i32 -> vector<4x512xf32>
    %c5 = arith.constant 5 : index
    %c0_29 = arith.constant 0 : index
    %c0_30 = arith.constant 0 : index
    %48 = vector.load %arg2[%c5, %c0_29, %c0_30] : memref<9x1x512xf32, #tpu.memory_space<vmem>>, vector<1x1x512xf32>
    %49 = vector.shape_cast %48 : vector<1x1x512xf32> to vector<1x512xf32>
    %50 = vector.broadcast %49 : vector<1x512xf32> to vector<4x512xf32>
    %51 = arith.mulf %47, %50 : vector<4x512xf32>
    %c5_31 = arith.constant 5 : index
    %c0_32 = arith.constant 0 : index
    %c0_33 = arith.constant 0 : index
    %52 = vector.load %arg3[%c5_31, %c0_32, %c0_33] : memref<9x4x4xbf16, #tpu.memory_space<vmem>>, vector<1x4x4xbf16>
    %53 = vector.shape_cast %52 : vector<1x4x4xbf16> to vector<4x4xbf16>
    %54 = arith.truncf %51 : vector<4x512xf32> to vector<4x512xbf16>
    %cst_34 = arith.constant dense<0.000000e+00> : vector<4x512xf32>
    %55 = tpu.matmul %53, %54, %cst_34 {dimension_numbers = #tpu.dot_dimension_numbers<[1], [0], [0], [1], [0, 0, 1, 1], [], []>} : vector<4x4xbf16>, vector<4x512xbf16>, vector<4x512xf32> -> vector<4x512xf32>
    %56 = arith.addf %46, %55 : vector<4x512xf32>
    %c497_i32 = arith.constant 497 : i32
    %57 = tpu.dynamic_rotate %2 by %c497_i32 dim 1 : vector<4x512xf32>, i32 -> vector<4x512xf32>
    %c6 = arith.constant 6 : index
    %c0_35 = arith.constant 0 : index
    %c0_36 = arith.constant 0 : index
    %58 = vector.load %arg2[%c6, %c0_35, %c0_36] : memref<9x1x512xf32, #tpu.memory_space<vmem>>, vector<1x1x512xf32>
    %59 = vector.shape_cast %58 : vector<1x1x512xf32> to vector<1x512xf32>
    %60 = vector.broadcast %59 : vector<1x512xf32> to vector<4x512xf32>
    %61 = arith.mulf %57, %60 : vector<4x512xf32>
    %c6_37 = arith.constant 6 : index
    %c0_38 = arith.constant 0 : index
    %c0_39 = arith.constant 0 : index
    %62 = vector.load %arg3[%c6_37, %c0_38, %c0_39] : memref<9x4x4xbf16, #tpu.memory_space<vmem>>, vector<1x4x4xbf16>
    %63 = vector.shape_cast %62 : vector<1x4x4xbf16> to vector<4x4xbf16>
    %64 = arith.truncf %61 : vector<4x512xf32> to vector<4x512xbf16>
    %cst_40 = arith.constant dense<0.000000e+00> : vector<4x512xf32>
    %65 = tpu.matmul %63, %64, %cst_40 {dimension_numbers = #tpu.dot_dimension_numbers<[1], [0], [0], [1], [0, 0, 1, 1], [], []>} : vector<4x4xbf16>, vector<4x512xbf16>, vector<4x512xf32> -> vector<4x512xf32>
    %66 = arith.addf %56, %65 : vector<4x512xf32>
    %c496_i32 = arith.constant 496 : i32
    %67 = tpu.dynamic_rotate %2 by %c496_i32 dim 1 : vector<4x512xf32>, i32 -> vector<4x512xf32>
    %c7 = arith.constant 7 : index
    %c0_41 = arith.constant 0 : index
    %c0_42 = arith.constant 0 : index
    %68 = vector.load %arg2[%c7, %c0_41, %c0_42] : memref<9x1x512xf32, #tpu.memory_space<vmem>>, vector<1x1x512xf32>
    %69 = vector.shape_cast %68 : vector<1x1x512xf32> to vector<1x512xf32>
    %70 = vector.broadcast %69 : vector<1x512xf32> to vector<4x512xf32>
    %71 = arith.mulf %67, %70 : vector<4x512xf32>
    %c7_43 = arith.constant 7 : index
    %c0_44 = arith.constant 0 : index
    %c0_45 = arith.constant 0 : index
    %72 = vector.load %arg3[%c7_43, %c0_44, %c0_45] : memref<9x4x4xbf16, #tpu.memory_space<vmem>>, vector<1x4x4xbf16>
    %73 = vector.shape_cast %72 : vector<1x4x4xbf16> to vector<4x4xbf16>
    %74 = arith.truncf %71 : vector<4x512xf32> to vector<4x512xbf16>
    %cst_46 = arith.constant dense<0.000000e+00> : vector<4x512xf32>
    %75 = tpu.matmul %73, %74, %cst_46 {dimension_numbers = #tpu.dot_dimension_numbers<[1], [0], [0], [1], [0, 0, 1, 1], [], []>} : vector<4x4xbf16>, vector<4x512xbf16>, vector<4x512xf32> -> vector<4x512xf32>
    %76 = arith.addf %66, %75 : vector<4x512xf32>
    %c495_i32 = arith.constant 495 : i32
    %77 = tpu.dynamic_rotate %2 by %c495_i32 dim 1 : vector<4x512xf32>, i32 -> vector<4x512xf32>
    %c8 = arith.constant 8 : index
    %c0_47 = arith.constant 0 : index
    %c0_48 = arith.constant 0 : index
    %78 = vector.load %arg2[%c8, %c0_47, %c0_48] : memref<9x1x512xf32, #tpu.memory_space<vmem>>, vector<1x1x512xf32>
    %79 = vector.shape_cast %78 : vector<1x1x512xf32> to vector<1x512xf32>
    %80 = vector.broadcast %79 : vector<1x512xf32> to vector<4x512xf32>
    %81 = arith.mulf %77, %80 : vector<4x512xf32>
    %c8_49 = arith.constant 8 : index
    %c0_50 = arith.constant 0 : index
    %c0_51 = arith.constant 0 : index
    %82 = vector.load %arg3[%c8_49, %c0_50, %c0_51] : memref<9x4x4xbf16, #tpu.memory_space<vmem>>, vector<1x4x4xbf16>
    %83 = vector.shape_cast %82 : vector<1x4x4xbf16> to vector<4x4xbf16>
    %84 = arith.truncf %81 : vector<4x512xf32> to vector<4x512xbf16>
    %cst_52 = arith.constant dense<0.000000e+00> : vector<4x512xf32>
    %85 = tpu.matmul %83, %84, %cst_52 {dimension_numbers = #tpu.dot_dimension_numbers<[1], [0], [0], [1], [0, 0, 1, 1], [], []>} : vector<4x4xbf16>, vector<4x512xbf16>, vector<4x512xf32> -> vector<4x512xf32>
    %86 = arith.addf %76, %85 : vector<4x512xf32>
    %cst_53 = arith.constant dense<0.000000e+00> : vector<4xf32>
    %87 = vector.multi_reduction <add>, %86, %cst_53 [1] : vector<4x512xf32> to vector<4xf32>
    %88 = vector.shape_cast %87 : vector<4xf32> to vector<4x1xf32>
    %cst_54 = arith.constant 0.001953125 : f32
    %89 = vector.broadcast %cst_54 : f32 to vector<4x1xf32>
    %90 = arith.mulf %88, %89 : vector<4x1xf32>
    %91 = vector.broadcast %90 : vector<4x1xf32> to vector<4x512xf32>
    %92 = arith.subf %86, %91 : vector<4x512xf32>
    %93 = arith.mulf %92, %92 : vector<4x512xf32>
    %cst_55 = arith.constant dense<0.000000e+00> : vector<4xf32>
    %94 = vector.multi_reduction <add>, %93, %cst_55 [1] : vector<4x512xf32> to vector<4xf32>
    %95 = vector.shape_cast %94 : vector<4xf32> to vector<4x1xf32>
    %cst_56 = arith.constant 0.001953125 : f32
    %96 = vector.broadcast %cst_56 : f32 to vector<4x1xf32>
    %97 = arith.mulf %95, %96 : vector<4x1xf32>
    %c0_57 = arith.constant 0 : index
    %c0_58 = arith.constant 0 : index
    %98 = vector.load %arg4[%c0_57, %c0_58] : memref<4x1xf32, #tpu.memory_space<vmem>>, vector<4x1xf32>
    %cst_59 = arith.constant 9.99999974E-6 : f32
    %99 = vector.broadcast %cst_59 : f32 to vector<4x1xf32>
    %100 = arith.addf %97, %99 : vector<4x1xf32>
    %101 = math.rsqrt %100 : vector<4x1xf32>
    %102 = arith.mulf %98, %101 : vector<4x1xf32>
    %103 = vector.broadcast %102 : vector<4x1xf32> to vector<4x512xf32>
    %104 = arith.mulf %92, %103 : vector<4x512xf32>
    %c0_60 = arith.constant 0 : index
    %c0_61 = arith.constant 0 : index
    %105 = vector.load %arg5[%c0_60, %c0_61] : memref<4x1xf32, #tpu.memory_space<vmem>>, vector<4x1xf32>
    %106 = vector.broadcast %105 : vector<4x1xf32> to vector<4x512xf32>
    %107 = arith.addf %104, %106 : vector<4x512xf32>
    %cst_62 = arith.constant 0.000000e+00 : f32
    %108 = vector.broadcast %cst_62 : f32 to vector<4x512xf32>
    %109 = arith.maximumf %107, %108 : vector<4x512xf32>
    %c0_63 = arith.constant 0 : index
    %c0_64 = arith.constant 0 : index
    %110 = vector.load %arg6[%c0_63, %c0_64] : memref<4x4xbf16, #tpu.memory_space<vmem>>, vector<4x4xbf16>
    %111 = arith.truncf %109 : vector<4x512xf32> to vector<4x512xbf16>
    %cst_65 = arith.constant dense<0.000000e+00> : vector<4x512xf32>
    %112 = tpu.matmul %110, %111, %cst_65 {dimension_numbers = #tpu.dot_dimension_numbers<[1], [0], [0], [1], [0, 0, 1, 1], [], []>} : vector<4x4xbf16>, vector<4x512xbf16>, vector<4x512xf32> -> vector<4x512xf32>
    %cst_66 = arith.constant dense<0.000000e+00> : vector<4xf32>
    %113 = vector.multi_reduction <add>, %112, %cst_66 [1] : vector<4x512xf32> to vector<4xf32>
    %114 = vector.shape_cast %113 : vector<4xf32> to vector<4x1xf32>
    %cst_67 = arith.constant 0.001953125 : f32
    %115 = vector.broadcast %cst_67 : f32 to vector<4x1xf32>
    %116 = arith.mulf %114, %115 : vector<4x1xf32>
    %117 = vector.broadcast %116 : vector<4x1xf32> to vector<4x512xf32>
    %118 = arith.subf %112, %117 : vector<4x512xf32>
    %119 = arith.mulf %118, %118 : vector<4x512xf32>
    %cst_68 = arith.constant dense<0.000000e+00> : vector<4xf32>
    %120 = vector.multi_reduction <add>, %119, %cst_68 [1] : vector<4x512xf32> to vector<4xf32>
    %121 = vector.shape_cast %120 : vector<4xf32> to vector<4x1xf32>
    %cst_69 = arith.constant 0.001953125 : f32
    %122 = vector.broadcast %cst_69 : f32 to vector<4x1xf32>
    %123 = arith.mulf %121, %122 : vector<4x1xf32>
    %c0_70 = arith.constant 0 : index
    %c0_71 = arith.constant 0 : index
    %124 = vector.load %arg7[%c0_70, %c0_71] : memref<4x1xf32, #tpu.memory_space<vmem>>, vector<4x1xf32>
    %cst_72 = arith.constant 9.99999974E-6 : f32
    %125 = vector.broadcast %cst_72 : f32 to vector<4x1xf32>
    %126 = arith.addf %123, %125 : vector<4x1xf32>
    %127 = math.rsqrt %126 : vector<4x1xf32>
    %128 = arith.mulf %124, %127 : vector<4x1xf32>
    %129 = vector.broadcast %128 : vector<4x1xf32> to vector<4x512xf32>
    %130 = arith.mulf %118, %129 : vector<4x512xf32>
    %131 = arith.addf %0, %130 : vector<4x512xf32>
    %c0_73 = arith.constant 0 : index
    %c0_74 = arith.constant 0 : index
    %132 = vector.load %arg8[%c0_73, %c0_74] : memref<4x1xf32, #tpu.memory_space<vmem>>, vector<4x1xf32>
    %133 = vector.broadcast %132 : vector<4x1xf32> to vector<4x512xf32>
    %134 = arith.addf %131, %133 : vector<4x512xf32>
    %c0_75 = arith.constant 0 : index
    %c0_76 = arith.constant 0 : index
    %135 = vector.load %arg9[%c0_75, %c0_76] : memref<4x512xf32, #tpu.memory_space<vmem>>, vector<4x512xf32>
    tpu.vector_store %arg9[%c0_75, %c0_76], %134 {strides = array<i32>} : memref<4x512xf32, #tpu.memory_space<vmem>>, vector<4x512xf32>,
    return
  }
  func.func @transform_0(%arg0: i32) -> (i32, i32) {
    %c0_i32 = arith.constant 0 : i32
    %c0_i32_0 = arith.constant 0 : i32
    %c0_i32_1 = arith.constant 0 : i32
    return %c0_i32, %c0_i32_0 : i32, i32
  }
  func.func @transform_1(%arg0: i32) -> (i32, i32, i32) {
    %c0_i32 = arith.constant 0 : i32
    %c0_i32_0 = arith.constant 0 : i32
    %c0_i32_1 = arith.constant 0 : i32
    %c0_i32_2 = arith.constant 0 : i32
    return %c0_i32, %c0_i32_0, %c0_i32_1 : i32, i32, i32
  }
  func.func @transform_2(%arg0: i32) -> (i32, i32, i32) {
    %c0_i32 = arith.constant 0 : i32
    %c0_i32_0 = arith.constant 0 : i32
    %c0_i32_1 = arith.constant 0 : i32
    %c0_i32_2 = arith.constant 0 : i32
    return %c0_i32, %c0_i32_0, %c0_i32_1 : i32, i32, i32
  }
  func.func @transform_3(%arg0: i32) -> (i32, i32) {
    %c0_i32 = arith.constant 0 : i32
    %c0_i32_0 = arith.constant 0 : i32
    %c0_i32_1 = arith.constant 0 : i32
    return %c0_i32, %c0_i32_0 : i32, i32
  }
  func.func @transform_4(%arg0: i32) -> (i32, i32) {
    %c0_i32 = arith.constant 0 : i32
    %c0_i32_0 = arith.constant 0 : i32
    %c0_i32_1 = arith.constant 0 : i32
    return %c0_i32, %c0_i32_0 : i32, i32
  }
  func.func @transform_5(%arg0: i32) -> (i32, i32) {
    %c0_i32 = arith.constant 0 : i32
    %c0_i32_0 = arith.constant 0 : i32
    %c0_i32_1 = arith.constant 0 : i32
    return %c0_i32, %c0_i32_0 : i32, i32
  }
  func.func @transform_6(%arg0: i32) -> (i32, i32) {
    %c0_i32 = arith.constant 0 : i32
    %c0_i32_0 = arith.constant 0 : i32
    %c0_i32_1 = arith.constant 0 : i32
    return %c0_i32, %c0_i32_0 : i32, i32
  }
  func.func @transform_7(%arg0: i32) -> (i32, i32) {
    %c0_i32 = arith.constant 0 : i32
    %c0_i32_0 = arith.constant 0 : i32
    %c0_i32_1 = arith.constant 0 : i32
    return %c0_i32, %c0_i32_0 : i32, i32
  }
  func.func @transform_8(%arg0: i32) -> (i32, i32) {
    %c0_i32 = arith.constant 0 : i32
    %c0_i32_0 = arith.constant 0 : i32
    %c0_i32_1 = arith.constant 0 : i32
    return %c0_i32, %c0_i32_0 : i32, i32
  }
}

</mosaic_0001>

<bundles_post_ra>
// kernel: tpu_custom_call.1
= control target key start
LH: loop header
LB: loop body
LE: loop exit
PB: predicated region body
PF: predicated region fallthrough
CT: control target
= control target key end

     0   :  { %13 = vsyncpa [#allocation3], 0  ;;  %s1741_s0 = inlined_call_operand.vmem [shape: f32[4,512], index: 0, kind: input, shape index: {}]   ;;  %s1742_s1 = inlined_call_operand.hbm [shape: f32[9,1,512], index: 1, kind: input, shape index: {}]   ;;  %s1743_s2 = inlined_call_operand.vmem [shape: bf16[9,4,4], index: 2, kind: input, shape index: {}]   ;;  %s1744_s3 = inlined_call_operand.vmem [shape: f32[4,1], index: 3, kind: input, shape index: {}]   ;;  %s1745_s4 = inlined_call_operand.vmem [shape: f32[4,1], index: 4, kind: input, shape index: {}]   ;;  %s1746_s5 = inlined_call_operand.vmem [shape: bf16[4,4], index: 5, kind: input, shape index: {}]   ;;  %s1747_s6 = inlined_call_operand.vmem [shape: f32[4,1], index: 6, kind: input, shape index: {}]   ;;  %s1748_s7 = inlined_call_operand.vmem [shape: f32[4,1], index: 7, kind: input, shape index: {}]   ;;  %s1749_s8 = inlined_call_operand.hbm [shape: f32[4,512], index: 8, kind: output, shape index: {}]  }
   0x1   :  { %14 = vsyncpa [#allocation4], 0  ;;  %s21_s29 = sshll.u32 %s1742_s1, 4  ;;  %s1416_s30 = smov [#allocation2]   ;;  %s22_s29 = int_to_ptr.hbm [resolvable:$true] %s21_s29 }
   0x2   :  { %s23_s9 = sshll.u32 %s1416_s30, 4  ;;  %s1417_s10 = smov 64   ;;  %s24_s9 = int_to_ptr.vmem [resolvable:$true] %s23_s9 }
   0x3   :  { %s1418_s11 = smov 4  }
   0x4   :  { %29 = dma.hbm_to_vmem [thread:$0]  %s22_s29, 576, %s24_s9, [#allocation3], %s1417_s10, %s1417_s10, %s1418_s11  }
   0x5   :  { %1412 = dma.done.wait [#allocation3], 576  }
   0x6   :  { %1413 = vsyncadd [#allocation3], 4294966720  ;;  %v48_v0 = vld [vmem:[%s1741_s0 + $0x8] sm:$0xff]  ;;  %v47_v1 = vld [vmem:[%s1741_s0] sm:$0xff]  ;;  %s1419_s1 = smov 17   ;;  %s1420_s16 = smov 16   ;;  %v72_v41 = vlaneseq }
   0x7   :  { %v1484_v2 = vmax.f32 %v48_v0, 0.0  ;;  %v1486_v3 = vmax.f32 %v47_v1, 0.0  ;;  %s1421_s17 = smov 15   ;;  %s1422_s18 = smov 1   ;;  %v1522_v45 = vld [vmem:[#allocation2] sm:$0xf] }
   0x8   :  { %s1423_s19 = smov 127   ;;  %s1424_s20 = smov 113   ;;  %v1520_v43 = vand.u32 127, %v72_v41  ;;  %v123_v47 = vld [vmem:[#allocation2 + $0x4] sm:$0xf]  ;;  %v83_v48 = vperm.slane %v1522_v45, 2 }
   0x9   :  { %55 = vst [vmem:[#allocation1 + $0x10] ss:$2 sm:$0xff] %v1484_v2  ;;  %s1425_s21 = smov 112   ;;  %s1426_s22 = smov 111   ;;  %v125_v51 = vperm.slane %v123_v47, 0  ;;  %v126_v52 = vperm.slane %v123_v47, 1 }
   0xa   :  { %53 = vst [vmem:[#allocation1] ss:$2 sm:$0xff] %v1486_v3  ;;  %vm74_vm0 = vcmp.lt.s32.totalorder %v1520_v43, 17  ;;  %vm117_vm1 = vcmp.lt.s32.totalorder %v1520_v43, 16  ;;  %v1531_v53 = vld [vmem:[#allocation2 + $0x8] sm:$0xf] }
   0xb   :  { %vm298_vm2 = vcmp.lt.s32.totalorder %v1520_v43, 15  ;;  %v127_v57 = vperm.slane %v123_v47, 2  ;;  %v128_v58 = vperm.slane %v123_v47, 3  ;;  %v307_v61 = vperm.slane %v1531_v53, 1  ;;  %s1429_s26 = smov [#allocation5]   ;;  %s1283_s30 = sshll.u32 %s1749_s8, 4  ;;  %s1284_s30 = int_to_ptr.hbm [resolvable:$true] %s1283_s30 }
   0xc   :  { %vm147_vm3 = vcmask 1041408   ;;  %vm143_vm4 = vcmask 31744   ;;  %vm414_vm5 = vcmp.lt.s32.totalorder %v1520_v43, 1  ;;  %vm618_vm6 = vcmp.lt.s32.totalorder %v1520_v43, 127  ;;  %s1281_s27 = sshll.u32 %s1429_s26, 4  ;;  %s1282_s27 = int_to_ptr.vmem [resolvable:$true] %s1281_s27 }
   0xd   :  { %vm734_vm7 = vcmp.lt.s32.totalorder %v1520_v43, 113  ;;  %vm850_vm8 = vcmp.lt.s32.totalorder %v1520_v43, 112  ;;  %vm966_vm9 = vcmp.lt.s32.totalorder %v1520_v43, 111  ;;  %vm1063_vm10 = vcmask 1043456  }
  0x10   :  { %v58_v4 = vld.sshfl [vmem:[#allocation1 + $0x10] sm:$0xff pattern:$0x75316420]  ;;  %v59_v5 = vld.sshfl [vmem:[#allocation1 + $0x18] sm:$0xff pattern:$0x75316420] }
  0x11   :  { %100 = vst [vmem:[#allocation1 + $0x10] ss:$2 sm:$0xff] %v1484_v2  ;;  %v56_v6 = vld.sshfl [vmem:[#allocation1] sm:$0xff pattern:$0x75316420] }
  0x12   :  { %v57_v7 = vld.sshfl [vmem:[#allocation1 + $0x8] sm:$0xff pattern:$0x75316420] }
  0x13   :  { %98 = vst [vmem:[#allocation1] ss:$2 sm:$0xff] %v1486_v3  ;;  %66 = vrot.lane.b32.xlu2 %v57_v7, %s1419_s1 }
  0x18   :  { %v104_v8 = vld.sshfl [vmem:[#allocation1 + $0x18] sm:$0xff pattern:$0x75316420]  ;;  %v103_v9 = vld.sshfl [vmem:[#allocation1 + $0x10] sm:$0xff pattern:$0x75316420] }
  0x19   :  { %115 = vrot.lane.b32.xlu1 %v104_v8, %s1420_s16  ;;  %281 = vst [vmem:[#allocation1 + $0x10] ss:$2 sm:$0xff] %v1484_v2 }
  0x1a   :  { %v102_v10 = vld.sshfl [vmem:[#allocation1 + $0x8] sm:$0xff pattern:$0x75316420]  ;;  %v101_v11 = vld.sshfl [vmem:[#allocation1] sm:$0xff pattern:$0x75316420] }
  0x1b   :  { %111 = vrot.lane.b32.xlu0 %v102_v10, %s1420_s16  ;;  %279 = vst [vmem:[#allocation1] ss:$2 sm:$0xff] %v1486_v3  ;;  %68 = vrot.lane.b32.xlu2 %v58_v4, %s1419_s1 }
  0x20   :  { %v284_v12 = vld.sshfl [vmem:[#allocation1 + $0x10] sm:$0xff pattern:$0x75316420]  ;;  %v285_v13 = vld.sshfl [vmem:[#allocation1 + $0x18] sm:$0xff pattern:$0x75316420] }
  0x21   :  { %109 = vrot.lane.b32.xlu1 %v101_v11, %s1420_s16  ;;  %397 = vst [vmem:[#allocation1 + $0x10] ss:$2 sm:$0xff] %v1484_v2 }
  0x22   :  { %v282_v14 = vld.sshfl [vmem:[#allocation1] sm:$0xff pattern:$0x75316420]  ;;  %v283_v15 = vld.sshfl [vmem:[#allocation1 + $0x8] sm:$0xff pattern:$0x75316420] }
  0x23   :  { %113 = vrot.lane.b32.xlu0 %v103_v9, %s1420_s16  ;;  %395 = vst [vmem:[#allocation1] ss:$2 sm:$0xff] %v1486_v3  ;;  %292 = vrot.lane.b32.xlu2 %v283_v15, %s1421_s17  ;;  %v82_v9 = vperm.slane %v1522_v45, 1  ;;  %v1293_v15 = vld [vmem:[%s1743_s2 + $0x2] sm:$0x3] }
  0x28   :  { %v401_v16 = vld.sshfl [vmem:[#allocation1 + $0x18] sm:$0xff pattern:$0x75316420]  ;;  %v400_v17 = vld.sshfl [vmem:[#allocation1 + $0x10] sm:$0xff pattern:$0x75316420] }
  0x29   :  { %64 = vrot.lane.b32.xlu1 %v56_v6, %s1419_s1  ;;  %515 = vst [vmem:[#allocation1 + $0x10] ss:$2 sm:$0xff] %v1484_v2 }
  0x2a   :  { %v399_v18 = vld.sshfl [vmem:[#allocation1 + $0x8] sm:$0xff pattern:$0x75316420]  ;;  %v398_v19 = vld.sshfl [vmem:[#allocation1] sm:$0xff pattern:$0x75316420] }
  0x2b   :  { %70 = vrot.lane.b32.xlu0 %v59_v5, %s1419_s1  ;;  %513 = vst [vmem:[#allocation1] ss:$2 sm:$0xff] %v1486_v3  ;;  %290 = vrot.lane.b32.xlu2 %v282_v14, %s1421_s17 }
  0x30   :  { %v1498_v20 = vld.sshfl [vmem:[#allocation1 + $0x10] sm:$0xff pattern:$0x75316420]  ;;  %v1500_v21 = vld.sshfl [vmem:[#allocation1 + $0x18] sm:$0xff pattern:$0x75316420] }
  0x31   :  { %296 = vrot.lane.b32.xlu1 %v285_v13, %s1421_s17  ;;  %601 = vst [vmem:[#allocation1 + $0x10] ss:$2 sm:$0xff] %v1484_v2 }
  0x32   :  { %v1503_v22 = vld.sshfl [vmem:[#allocation1] sm:$0xff pattern:$0x75316420]  ;;  %v1505_v23 = vld.sshfl [vmem:[#allocation1 + $0x8] sm:$0xff pattern:$0x75316420] }
  0x33   :  { %294 = vrot.lane.b32.xlu0 %v284_v12, %s1421_s17  ;;  %599 = vst [vmem:[#allocation1] ss:$2 sm:$0xff] %v1486_v3  ;;  %412 = vrot.lane.b32.xlu2 %v401_v16, %s1422_s18  ;;  %v81_v16 = vperm.slane %v1522_v45, 0 }
  0x38   :  { %v604_v24 = vld.sshfl [vmem:[#allocation1 + $0x10] sm:$0xff pattern:$0x75316420]  ;;  %v605_v25 = vld.sshfl [vmem:[#allocation1 + $0x18] sm:$0xff pattern:$0x75316420] }
  0x39   :  { %410 = vrot.lane.b32.xlu1 %v400_v17, %s1422_s18  ;;  %717 = vst [vmem:[#allocation1 + $0x10] ss:$2 sm:$0xff] %v1484_v2 }
  0x3a   :  { %v603_v26 = vld.sshfl [vmem:[#allocation1 + $0x8] sm:$0xff pattern:$0x75316420]  ;;  %v602_v27 = vld.sshfl [vmem:[#allocation1] sm:$0xff pattern:$0x75316420] }
  0x3b   :  { %408 = vrot.lane.b32.xlu0 %v399_v18, %s1422_s18  ;;  %715 = vst [vmem:[#allocation1] ss:$2 sm:$0xff] %v1486_v3  ;;  %616 = vrot.lane.b32.xlu2 %v605_v25, %s1423_s19  ;;  %v84_v25 = vperm.slane %v1522_v45, 3  ;;  %v309_v45 = vperm.slane %v1531_v53, 3 }
  0x40   :  { %v720_v28 = vld.sshfl [vmem:[#allocation1 + $0x10] sm:$0xff pattern:$0x75316420]  ;;  %v721_v29 = vld.sshfl [vmem:[#allocation1 + $0x18] sm:$0xff pattern:$0x75316420] }
  0x41   :  { %614 = vrot.lane.b32.xlu1 %v604_v24, %s1423_s19  ;;  %833 = vst [vmem:[#allocation1 + $0x10] ss:$2 sm:$0xff] %v1484_v2 }
  0x42   :  { %v719_v30 = vld.sshfl [vmem:[#allocation1 + $0x8] sm:$0xff pattern:$0x75316420]  ;;  %v718_v31 = vld.sshfl [vmem:[#allocation1] sm:$0xff pattern:$0x75316420] }
  0x43   :  { %406 = vrot.lane.b32.xlu0 %v398_v19, %s1422_s18  ;;  %831 = vst [vmem:[#allocation1] ss:$2 sm:$0xff] %v1486_v3  ;;  %730 = vrot.lane.b32.xlu2 %v720_v28, %s1424_s20 }
  0x48   :  { %v836_v33 = vld.sshfl [vmem:[#allocation1 + $0x10] sm:$0xff pattern:$0x75316420]  ;;  %v837_v34 = vld.sshfl [vmem:[#allocation1 + $0x18] sm:$0xff pattern:$0x75316420] }
  0x49   :  { %612 = vrot.lane.b32.xlu1 %v603_v26, %s1423_s19  ;;  %949 = vst [vmem:[#allocation1 + $0x10] ss:$2 sm:$0xff] %v1484_v2 }
  0x4a   :  { %v834_v32 = vld.sshfl [vmem:[#allocation1] sm:$0xff pattern:$0x75316420]  ;;  %v835_v35 = vld.sshfl [vmem:[#allocation1 + $0x8] sm:$0xff pattern:$0x75316420] }
  0x4b   :  { %610 = vrot.lane.b32.xlu0 %v602_v27, %s1423_s19  ;;  %728 = vrot.lane.b32.xlu2 %v719_v30, %s1424_s20  ;;  %947 = vst [vmem:[#allocation1] ss:$2 sm:$0xff] %v1486_v3 }
  0x50   :  { %v952_v37 = vld.sshfl [vmem:[#allocation1 + $0x10] sm:$0xff pattern:$0x75316420]  ;;  %v953_v50 = vld.sshfl [vmem:[#allocation1 + $0x18] sm:$0xff pattern:$0x75316420] }
  0x51   :  { %726 = vrot.lane.b32.xlu1 %v718_v31, %s1424_s20 }
  0x52   :  { %v951_v38 = vld.sshfl [vmem:[#allocation1 + $0x8] sm:$0xff pattern:$0x75316420]  ;;  %v950_v39 = vld.sshfl [vmem:[#allocation1] sm:$0xff pattern:$0x75316420] }
  0x53   :  { %732 = vrot.lane.b32.xlu0 %v721_v29, %s1424_s20  ;;  %842 = vrot.lane.b32.xlu2 %v834_v32, %s1425_s21 }
  0x59   :  { %848 = vrot.lane.b32.xlu1 %v837_v34, %s1425_s21 }
  0x5b   :  { %846 = vrot.lane.b32.xlu0 %v836_v33, %s1425_s21  ;;  %964 = vrot.lane.b32.xlu2 %v953_v50, %s1426_s22 }
  0x61   :  { %962 = vrot.lane.b32.xlu1 %v952_v37, %s1426_s22 }
  0x63   :  { %844 = vrot.lane.b32.xlu0 %v835_v35, %s1425_s21 }
  0x69   :  { %960 = vrot.lane.b32.xlu1 %v951_v38, %s1426_s22 }
  0x6b   :  { %958 = vrot.lane.b32.xlu0 %v950_v39, %s1426_s22  ;;  %v306_v39 = vperm.slane %v1531_v53, 0 }
  0x6d   :  { %v1514_v36 = vpop.permute.xlu2 %66 }
  0x75   :  { %v1516_v40 = vpop.permute.xlu2 %68 }
  0x76   :  { %v76_v49 = vsel %vm74_vm0, %v1514_v36, %v1516_v40 }
  0x77   :  { %v91_v54 = vmul.f32 %v83_v48, %v76_v49 }
  0x79   :  { %v96_v4 = vpack.c.bf16 %v91_v54, %v91_v54 }
  0x7b   :  { %v222_v24 = vsel %vm147_vm3, %v96_v4, 0 }
  0x7d   :  { %v1518_v42 = vpop.permute.xlu2 %292 }
  0x85   :  { %v1534_v55 = vpop.permute.xlu2 %290 }
  0x86   :  { %v301_v1 = vsel %vm298_vm2, %v1534_v55, %v1518_v42 }
  0x87   :  { %v315_v10 = vmul.f32 %v307_v61, %v301_v1 }
  0x89   :  { %v321_v27 = vpack.c.bf16 %v315_v10, %v315_v10 }
  0x8b   :  { %v116_v44 = vpop.permute.xlu1 %115  ;;  %v331_v35 = vsel %vm147_vm3, %v321_v27, 0  ;;  %v527_v27 = vpack.c.bf16 %v1500_v21, %v1500_v21 }
  0x8d   :  { %v112_v46 = vpop.permute.xlu0 %111  ;;  %v413_v61 = vpop.permute.xlu2 %412  ;;  %v541_v21 = vsel %vm147_vm3, %v527_v27, 0 }
  0x93   :  { %v110_v56 = vpop.permute.xlu1 %109 }
  0x94   :  { %v120_v59 = vsel %vm117_vm1, %v110_v56, %v112_v46  ;;  %v121_v60 = vsel %vm117_vm1, %v116_v44, %v110_v56  ;;  %v420_v56 = vld [vmem:[#allocation2 + $0xc] sm:$0xf] }
  0x95   :  { %v114_v62 = vpop.permute.xlu0 %113  ;;  %v133_v63 = vmul.f32 %v125_v51, %v121_v60  ;;  %v134_v0 = vmul.f32 %v126_v52, %v120_v59  ;;  %v425_v60 = vperm.slane %v420_v56, 3  ;;  %v422_v10 = vperm.slane %v420_v56, 0 }
  0x96   :  { %v118_v2 = vsel %vm117_vm1, %v114_v62, %v116_v44  ;;  %v119_v3 = vsel %vm117_vm1, %v112_v46, %v114_v62  ;;  %v308_v44 = vperm.slane %v1531_v53, 2 }
  0x97   :  { %v139_v5 = vpack.c.bf16 %v133_v63, %v133_v63  ;;  %v140_v6 = vpack.c.bf16 %v134_v0, %v134_v0  ;;  %v135_v7 = vmul.f32 %v127_v57, %v119_v3  ;;  %v136_v8 = vmul.f32 %v128_v58, %v118_v2 }
  0x98   :  { %v424_v63 = vperm.slane %v420_v56, 2 }
  0x99   :  { %v149_v11 = vsel %vm147_vm3, %v139_v5, 0  ;;  %v152_v12 = vsel %vm147_vm3, %v140_v6, 0  ;;  %v141_v13 = vpack.c.bf16 %v135_v7, %v135_v7  ;;  %v142_v14 = vpack.c.bf16 %v136_v8, %v136_v8 }
  0x9a   :  { %167 = vmatpush.bf16.msra.mxu0 %v149_v11  ;;  %180 = vmatpush.bf16.msra.mxu1 %v152_v12 }
  0x9b   :  { %v155_v17 = vsel %vm147_vm3, %v141_v13, 0  ;;  %v158_v18 = vsel %vm147_vm3, %v142_v14, 0  ;;  %v65_v19 = vpop.permute.xlu1 %64 }
  0x9c   :  { %193 = vmatpush.bf16.msra.mxu2 %v155_v17  ;;  %206 = vmatpush.bf16.msra.mxu3 %v158_v18  ;;  %v77_v26 = vsel %vm74_vm0, %v65_v19, %v1514_v36  ;;  %v524_v18 = vpack.c.bf16 %v1503_v22, %v1503_v22 }
  0x9d   :  { %v90_v28 = vmul.f32 %v82_v9, %v77_v26  ;;  %1294 = vmatmul.msk.bf16.vlgmr.msra.gmra.mxu0 %vm143_vm4, %v1293_v15  ;;  %1295 = vmatmul.msk.bf16.vlgmr.msra.gmra.mxu1 %vm143_vm4, %v1293_v15  ;;  %v71_v29 = vpop.permute.xlu0 %70  ;;  %v423_v9 = vperm.slane %v420_v56, 1  ;;  %v526_v26 = vpack.c.bf16 %v1498_v20, %v1498_v20 }
  0x9e   :  { %v75_v30 = vsel %vm74_vm0, %v1516_v40, %v71_v29  ;;  %v78_v31 = vsel %vm74_vm0, %v71_v29, %v65_v19  ;;  %v525_v19 = vpack.c.bf16 %v1505_v23, %v1505_v23  ;;  %v532_v22 = vsel %vm147_vm3, %v524_v18, 0 }
  0x9f   :  { %1296 = vmatmul.msk.bf16.vlgmr.msra.gmra.mxu2 %vm143_vm4, %v1293_v15  ;;  %1297 = vmatmul.msk.bf16.vlgmr.msra.gmra.mxu3 %vm143_vm4, %v1293_v15  ;;  %v95_v32 = vpack.c.bf16 %v90_v28, %v90_v28  ;;  %v89_v33 = vmul.f32 %v81_v16, %v78_v31  ;;  %v92_v34 = vmul.f32 %v84_v25, %v75_v30  ;;  %v1302_v28 = vld [vmem:[%s1743_s2 + $0x4] sm:$0x3]  ;;  %v538_v20 = vsel %vm147_vm3, %v526_v26, 0  ;;  %v624_v31 = vld [vmem:[#allocation2 + $0x14] sm:$0xf] }
  0xa0   :  { %260 = vmatpush.bf16.msrb.mxu2 %v222_v24  ;;  %v535_v23 = vsel %vm147_vm3, %v525_v19, 0 }
  0xa1   :  { %v219_v36 = vsel %vm147_vm3, %v95_v32, 0  ;;  %v94_v37 = vpack.c.bf16 %v89_v33, %v89_v33  ;;  %v97_v38 = vpack.c.bf16 %v92_v34, %v92_v34  ;;  %v617_v32 = vpop.permute.xlu2 %616  ;;  %v627_v34 = vperm.slane %v624_v31, 1 }
  0xa2   :  { %247 = vmatpush.bf16.msrb.mxu1 %v219_v36 }
  0xa3   :  { %v216_v40 = vsel %vm147_vm3, %v94_v37, 0  ;;  %v225_v41 = vsel %vm147_vm3, %v97_v38, 0  ;;  %v297_v46 = vpop.permute.xlu1 %296  ;;  %v628_v37 = vperm.slane %v624_v31, 2  ;;  %v626_v38 = vperm.slane %v624_v31, 0 }
  0xa4   :  { %234 = vmatpush.bf16.msrb.mxu0 %v216_v40  ;;  %273 = vmatpush.bf16.msrb.mxu3 %v225_v41  ;;  %v302_v47 = vsel %vm298_vm2, %v297_v46, %v1534_v55  ;;  %v93_v55 = vld [vmem:[%s1743_s2] sm:$0x3] }
  0xa5   :  { %v295_v48 = vpop.permute.xlu0 %294  ;;  %v314_v49 = vmul.f32 %v306_v39, %v302_v47  ;;  %v629_v39 = vperm.slane %v624_v31, 3 }
  0xa6   :  { %359 = vmatpush.bf16.msra.mxu1 %v331_v35  ;;  %v300_v50 = vsel %vm298_vm2, %v1518_v42, %v295_v48  ;;  %v299_v51 = vsel %vm298_vm2, %v295_v48, %v297_v46 }
  0xa7   :  { %v316_v52 = vmul.f32 %v308_v44, %v300_v50  ;;  %v317_v54 = vmul.f32 %v309_v45, %v299_v51  ;;  %v320_v53 = vpack.c.bf16 %v314_v49, %v314_v49 }
  0xa9   :  { %v322_v57 = vpack.c.bf16 %v316_v52, %v316_v52  ;;  %v323_v58 = vpack.c.bf16 %v317_v54, %v317_v54  ;;  %v328_v59 = vsel %vm147_vm3, %v320_v53, 0  ;;  %v731_v51 = vpop.permute.xlu2 %730  ;;  %v1307_v53 = vld [vmem:[%s1743_s2 + $0x6] sm:$0x3] }
  0xaa   :  { %346 = vmatpush.bf16.msra.mxu0 %v328_v59 }
  0xab   :  { %v334_v42 = vsel %vm147_vm3, %v322_v57, 0  ;;  %v337_v62 = vsel %vm147_vm3, %v323_v58, 0  ;;  %v411_v0 = vpop.permute.xlu1 %410 }
  0xac   :  { %372 = vmatpush.bf16.msra.mxu2 %v334_v42  ;;  %385 = vmatpush.bf16.msra.mxu3 %v337_v62  ;;  %v415_v1 = vsel %vm414_vm5, %v411_v0, %v413_v61 }
  0xad   :  { %1298 = vmatmul.msk.bf16.vlgmr.msrb.gmra.mxu0 %vm143_vm4, %v93_v55  ;;  %1299 = vmatmul.msk.bf16.vlgmr.msrb.gmra.mxu1 %vm143_vm4, %v93_v55  ;;  %v409_v2 = vpop.permute.xlu0 %408  ;;  %v433_v3 = vmul.f32 %v425_v60, %v415_v1  ;;  %v740_v60 = vld [vmem:[#allocation2 + $0x18] sm:$0xf] }
  0xae   :  { %v416_v4 = vsel %vm414_vm5, %v409_v2, %v411_v0  ;;  %v743_v42 = vperm.slane %v740_v60, 1  ;;  %v744_v0 = vperm.slane %v740_v60, 2  ;;  %v742_v1 = vperm.slane %v740_v60, 0 }
  0xaf   :  { %1300 = vmatmul.msk.bf16.vlgmr.msrb.gmra.mxu2 %vm143_vm4, %v93_v55  ;;  %1301 = vmatmul.msk.bf16.vlgmr.msrb.gmra.mxu3 %vm143_vm4, %v93_v55  ;;  %v432_v5 = vmul.f32 %v424_v63, %v416_v4  ;;  %v439_v6 = vpack.c.bf16 %v433_v3, %v433_v3 }
  0xb1   :  { %v438_v7 = vpack.c.bf16 %v432_v5, %v432_v5  ;;  %v453_v8 = vsel %vm147_vm3, %v439_v6, 0  ;;  %v729_v55 = vpop.permute.xlu2 %728 }
  0xb2   :  { %501 = vmatpush.bf16.msrb.mxu3 %v453_v8  ;;  %v736_v62 = vsel %vm734_vm7, %v729_v55, %v731_v51 }
  0xb3   :  { %v450_v11 = vsel %vm147_vm3, %v438_v7, 0  ;;  %v615_v13 = vpop.permute.xlu1 %614  ;;  %v751_v6 = vmul.f32 %v743_v42, %v736_v62 }
  0xb4   :  { %488 = vmatpush.bf16.msrb.mxu2 %v450_v11  ;;  %v619_v41 = vsel %vm618_vm6, %v615_v13, %v617_v32 }
  0xb5   :  { %v407_v12 = vpop.permute.xlu0 %406  ;;  %v636_v47 = vmul.f32 %v628_v37, %v619_v41  ;;  %v1317_v41 = vld [vmem:[%s1743_s2 + $0xa] sm:$0x3] }
  0xb6   :  { %v417_v14 = vsel %vm414_vm5, %v407_v12, %v409_v2  ;;  %v418_v15 = vsel %vm414_vm5, %v413_v61, %v407_v12  ;;  %v745_v2 = vperm.slane %v740_v60, 3 }
  0xb7   :  { %v431_v16 = vmul.f32 %v423_v9, %v417_v14  ;;  %v430_v17 = vmul.f32 %v422_v10, %v418_v15  ;;  %v642_v52 = vpack.c.bf16 %v636_v47, %v636_v47  ;;  %v757_v10 = vpack.c.bf16 %v751_v6, %v751_v6  ;;  %v1312_v15 = vld [vmem:[%s1743_s2 + $0x8] sm:$0x3] }
  0xb9   :  { %v437_v24 = vpack.c.bf16 %v431_v16, %v431_v16  ;;  %v436_v25 = vpack.c.bf16 %v430_v17, %v430_v17  ;;  %v654_v58 = vsel %vm147_vm3, %v642_v52, 0  ;;  %v767_v16 = vsel %vm147_vm3, %v757_v10, 0  ;;  %v1332_v10 = vld [vmem:[%s1743_s2 + $0x10] sm:$0x3] }
  0xbb   :  { %v447_v29 = vsel %vm147_vm3, %v437_v24, 0  ;;  %v444_v30 = vsel %vm147_vm3, %v436_v25, 0  ;;  %v613_v33 = vpop.permute.xlu1 %612  ;;  %v856_v24 = vld [vmem:[#allocation2 + $0x1c] sm:$0xf]  ;;  %v843_v25 = vpop.permute.xlu2 %842 }
  0xbc   :  { %475 = vmatpush.bf16.msrb.mxu1 %v447_v29  ;;  %462 = vmatpush.bf16.msrb.mxu0 %v444_v30  ;;  %v620_v35 = vsel %vm618_vm6, %v613_v33, %v615_v13  ;;  %v859_v27 = vperm.slane %v856_v24, 1  ;;  %v858_v29 = vperm.slane %v856_v24, 0  ;;  %v860_v30 = vperm.slane %v856_v24, 2 }
  0xbd   :  { %1303 = vmatmul.msk.bf16.vlgmr.msra.gmra.mxu0 %vm143_vm4, %v1302_v28  ;;  %1304 = vmatmul.msk.bf16.vlgmr.msra.gmra.mxu1 %vm143_vm4, %v1302_v28  ;;  %v611_v36 = vpop.permute.xlu0 %610  ;;  %v635_v45 = vmul.f32 %v627_v34, %v620_v35 }
  0xbe   :  { %v621_v40 = vsel %vm618_vm6, %v611_v36, %v613_v33  ;;  %v622_v44 = vsel %vm618_vm6, %v617_v32, %v611_v36 }
  0xbf   :  { %1305 = vmatmul.msk.bf16.vlgmr.msra.gmra.mxu2 %vm143_vm4, %v1302_v28  ;;  %1306 = vmatmul.msk.bf16.vlgmr.msra.gmra.mxu3 %vm143_vm4, %v1302_v28  ;;  %v634_v46 = vmul.f32 %v626_v38, %v621_v40  ;;  %v637_v48 = vmul.f32 %v629_v39, %v622_v44  ;;  %v641_v49 = vpack.c.bf16 %v635_v45, %v635_v45 }
  0xc0   :  { %550 = vmatpush.bf16.msra.mxu0 %v532_v22  ;;  %563 = vmatpush.bf16.msra.mxu1 %v535_v23  ;;  %v861_v23 = vperm.slane %v856_v24, 3 }
  0xc1   :  { %576 = vmatpush.bf16.msra.mxu2 %v538_v20  ;;  %589 = vmatpush.bf16.msra.mxu3 %v541_v21  ;;  %v640_v50 = vpack.c.bf16 %v634_v46, %v634_v46  ;;  %v643_v54 = vpack.c.bf16 %v637_v48, %v637_v48  ;;  %v651_v56 = vsel %vm147_vm3, %v641_v49, 0  ;;  %v972_v48 = vld [vmem:[#allocation2 + $0x20] sm:$0xf] }
  0xc2   :  { %v976_v52 = vperm.slane %v972_v48, 2 }
  0xc3   :  { %v648_v57 = vsel %vm147_vm3, %v640_v50, 0  ;;  %v657_v59 = vsel %vm147_vm3, %v643_v54, 0  ;;  %v727_v63 = vpop.permute.xlu1 %726  ;;  %v965_v49 = vpop.permute.xlu2 %964  ;;  %v975_v50 = vperm.slane %v972_v48, 1 }
  0xc4   :  { %v737_v3 = vsel %vm734_vm7, %v727_v63, %v729_v55 }
  0xc5   :  { %v733_v61 = vpop.permute.xlu0 %732  ;;  %v750_v7 = vmul.f32 %v742_v1, %v737_v3 }
  0xc6   :  { %v735_v4 = vsel %vm734_vm7, %v731_v51, %v733_v61  ;;  %v738_v5 = vsel %vm734_vm7, %v733_v61, %v727_v63  ;;  %v974_v51 = vperm.slane %v972_v48, 0 }
  0xc7   :  { %v752_v8 = vmul.f32 %v744_v0, %v735_v4  ;;  %v753_v9 = vmul.f32 %v745_v2, %v738_v5  ;;  %v756_v11 = vpack.c.bf16 %v750_v7, %v750_v7  ;;  %v1322_v2 = vld [vmem:[%s1743_s2 + $0xc] sm:$0x3]  ;;  %v1327_v7 = vld [vmem:[%s1743_s2 + $0xe] sm:$0x3] }
  0xc9   :  { %v758_v13 = vpack.c.bf16 %v752_v8, %v752_v8  ;;  %v759_v14 = vpack.c.bf16 %v753_v9, %v753_v9  ;;  %v764_v17 = vsel %vm147_vm3, %v756_v11, 0 }
  0xcb   :  { %v770_v18 = vsel %vm147_vm3, %v758_v13, 0  ;;  %v773_v19 = vsel %vm147_vm3, %v759_v14, 0  ;;  %v849_v26 = vpop.permute.xlu1 %848 }
  0xcc   :  { %v854_v31 = vsel %vm850_vm8, %v849_v26, %v843_v25 }
  0xcd   :  { %1308 = vmatmul.msk.bf16.vlgmr.msrb.gmra.mxu0 %vm143_vm4, %v1307_v53  ;;  %1309 = vmatmul.msk.bf16.vlgmr.msrb.gmra.mxu1 %vm143_vm4, %v1307_v53  ;;  %v847_v12 = vpop.permute.xlu0 %846  ;;  %v869_v35 = vmul.f32 %v861_v23, %v854_v31 }
  0xce   :  { %679 = vmatpush.bf16.msrb.mxu1 %v651_v56  ;;  %666 = vmatpush.bf16.msrb.mxu0 %v648_v57  ;;  %v851_v21 = vsel %vm850_vm8, %v847_v12, %v849_v26 }
  0xcf   :  { %1310 = vmatmul.msk.bf16.vlgmr.msrb.gmra.mxu2 %vm143_vm4, %v1307_v53  ;;  %1311 = vmatmul.msk.bf16.vlgmr.msrb.gmra.mxu3 %vm143_vm4, %v1307_v53  ;;  %v868_v34 = vmul.f32 %v860_v30, %v851_v21  ;;  %v875_v39 = vpack.c.bf16 %v869_v35, %v869_v35  ;;  %v977_v53 = vperm.slane %v972_v48, 3 }
  0xd0   :  { %692 = vmatpush.bf16.msrb.mxu2 %v654_v58  ;;  %705 = vmatpush.bf16.msrb.mxu3 %v657_v59 }
  0xd1   :  { %v874_v38 = vpack.c.bf16 %v868_v34, %v868_v34  ;;  %v889_v47 = vsel %vm147_vm3, %v875_v39, 0 }
  0xd3   :  { %v963_v40 = vpop.permute.xlu1 %962  ;;  %v886_v46 = vsel %vm147_vm3, %v874_v38, 0 }
  0xd4   :  { %v967_v56 = vsel %vm966_vm9, %v963_v40, %v965_v49 }
  0xd5   :  { %v845_v28 = vpop.permute.xlu0 %844  ;;  %v984_v42 = vmul.f32 %v976_v52, %v967_v56 }
  0xd6   :  { %v852_v22 = vsel %vm850_vm8, %v845_v28, %v847_v12  ;;  %v853_v20 = vsel %vm850_vm8, %v843_v25, %v845_v28 }
  0xd7   :  { %v867_v32 = vmul.f32 %v859_v27, %v852_v22  ;;  %v866_v33 = vmul.f32 %v858_v29, %v853_v20  ;;  %v990_v0 = vpack.c.bf16 %v984_v42, %v984_v42 }
  0xd9   :  { %v873_v36 = vpack.c.bf16 %v867_v32, %v867_v32  ;;  %v872_v37 = vpack.c.bf16 %v866_v33, %v866_v33  ;;  %v1002_v5 = vsel %vm147_vm3, %v990_v0, 0 }
  0xdb   :  { %v883_v44 = vsel %vm147_vm3, %v873_v36, 0  ;;  %v880_v45 = vsel %vm147_vm3, %v872_v37, 0  ;;  %v961_v54 = vpop.permute.xlu1 %960 }
  0xdc   :  { %v968_v57 = vsel %vm966_vm9, %v961_v54, %v963_v40 }
  0xdd   :  { %1313 = vmatmul.msk.bf16.vlgmr.msra.gmra.mxu0 %vm143_vm4, %v1312_v15  ;;  %1314 = vmatmul.msk.bf16.vlgmr.msra.gmra.mxu1 %vm143_vm4, %v1312_v15  ;;  %v959_v58 = vpop.permute.xlu0 %958  ;;  %v983_v59 = vmul.f32 %v975_v50, %v968_v57 }
  0xde   :  { %795 = vmatpush.bf16.msra.mxu1 %v767_v16  ;;  %782 = vmatpush.bf16.msra.mxu0 %v764_v17  ;;  %v969_v60 = vsel %vm966_vm9, %v959_v58, %v961_v54  ;;  %v970_v61 = vsel %vm966_vm9, %v965_v49, %v959_v58 }
  0xdf   :  { %1315 = vmatmul.msk.bf16.vlgmr.msra.gmra.mxu2 %vm143_vm4, %v1312_v15  ;;  %1316 = vmatmul.msk.bf16.vlgmr.msra.gmra.mxu3 %vm143_vm4, %v1312_v15  ;;  %v982_v55 = vmul.f32 %v974_v51, %v969_v60  ;;  %v985_v62 = vmul.f32 %v977_v53, %v970_v61  ;;  %v989_v63 = vpack.c.bf16 %v983_v59, %v983_v59 }
  0xe0   :  { %808 = vmatpush.bf16.msra.mxu2 %v770_v18  ;;  %821 = vmatpush.bf16.msra.mxu3 %v773_v19 }
  0xe1   :  { %v988_v43 = vpack.c.bf16 %v982_v55, %v982_v55  ;;  %v991_v1 = vpack.c.bf16 %v985_v62, %v985_v62  ;;  %v999_v3 = vsel %vm147_vm3, %v989_v63, 0 }
  0xe3   :  { %v996_v4 = vsel %vm147_vm3, %v988_v43, 0  ;;  %v1005_v6 = vsel %vm147_vm3, %v991_v1, 0 }
  0xed   :  { %1318 = vmatmul.msk.bf16.vlgmr.msrb.gmra.mxu0 %vm143_vm4, %v1317_v41  ;;  %1319 = vmatmul.msk.bf16.vlgmr.msrb.gmra.mxu1 %vm143_vm4, %v1317_v41 }
  0xee   :  { %911 = vmatpush.bf16.msrb.mxu1 %v883_v44  ;;  %898 = vmatpush.bf16.msrb.mxu0 %v880_v45 }
  0xef   :  { %1320 = vmatmul.msk.bf16.vlgmr.msrb.gmra.mxu2 %vm143_vm4, %v1317_v41  ;;  %1321 = vmatmul.msk.bf16.vlgmr.msrb.gmra.mxu3 %vm143_vm4, %v1317_v41 }
  0xf0   :  { %924 = vmatpush.bf16.msrb.mxu2 %v886_v46  ;;  %937 = vmatpush.bf16.msrb.mxu3 %v889_v47 }
  0xfd   :  { %1323 = vmatmul.msk.bf16.vlgmr.msra.gmra.mxu0 %vm143_vm4, %v1322_v2  ;;  %1324 = vmatmul.msk.bf16.vlgmr.msra.gmra.mxu1 %vm143_vm4, %v1322_v2 }
  0xfe   :  { %1027 = vmatpush.bf16.msra.mxu1 %v999_v3  ;;  %1014 = vmatpush.bf16.msra.mxu0 %v996_v4 }
  0xff   :  { %1325 = vmatmul.msk.bf16.vlgmr.msra.gmra.mxu2 %vm143_vm4, %v1322_v2  ;;  %1326 = vmatmul.msk.bf16.vlgmr.msra.gmra.mxu3 %vm143_vm4, %v1322_v2 }
 0x100   :  { %1040 = vmatpush.bf16.msra.mxu2 %v1002_v5  ;;  %1053 = vmatpush.bf16.msra.mxu3 %v1005_v6 }
 0x10d   :  { %1328 = vmatmul.msk.bf16.vlgmr.msrb.gmra.mxu0 %vm143_vm4, %v1327_v7  ;;  %1329 = vmatmul.msk.bf16.vlgmr.msrb.gmra.mxu1 %vm143_vm4, %v1327_v7 }
 0x10f   :  { %1330 = vmatmul.msk.bf16.vlgmr.msrb.gmra.mxu2 %vm143_vm4, %v1327_v7  ;;  %1331 = vmatmul.msk.bf16.vlgmr.msrb.gmra.mxu3 %vm143_vm4, %v1327_v7 }
 0x11a   :  { %v169_v8 = vpop.f32.mrf.mxu0  ;;  %v182_v9 = vpop.f32.mrf.mxu1 }
 0x11d   :  { %1333 = vmatmul.msk.bf16.vlgmr.msra.gmra.mxu0 %vm143_vm4, %v1332_v10  ;;  %1334 = vmatmul.msk.bf16.vlgmr.msra.gmra.mxu1 %vm143_vm4, %v1332_v10 }
 0x11f   :  { %1335 = vmatmul.msk.bf16.vlgmr.msra.gmra.mxu2 %vm143_vm4, %v1332_v10  ;;  %1336 = vmatmul.msk.bf16.vlgmr.msra.gmra.mxu3 %vm143_vm4, %v1332_v10 }
 0x122   :  { %v195_v11 = vpop.f32.mrf.mxu2  ;;  %v208_v12 = vpop.f32.mrf.mxu3 }
 0x123   :  { %v171_v13 = vpop.f32.mrf.mxu0  ;;  %v184_v14 = vpop.f32.mrf.mxu1 }
 0x12a   :  { %v197_v15 = vpop.f32.mrf.mxu2  ;;  %v210_v16 = vpop.f32.mrf.mxu3 }
 0x12b   :  { %v236_v17 = vpop.f32.mrf.mxu0  ;;  %v249_v18 = vpop.f32.mrf.mxu1 }
 0x12c   :  { %v237_v19 = vadd.f32 %v236_v17, %v169_v8  ;;  %v250_v24 = vadd.f32 %v249_v18, %v182_v9 }
 0x132   :  { %v262_v25 = vpop.f32.mrf.mxu2  ;;  %v275_v26 = vpop.f32.mrf.mxu3 }
 0x133   :  { %v263_v27 = vadd.f32 %v262_v25, %v195_v11  ;;  %v276_v28 = vadd.f32 %v275_v26, %v208_v12  ;;  %v238_v29 = vpop.f32.mrf.mxu0  ;;  %v251_v30 = vpop.f32.mrf.mxu1 }
 0x13a   :  { %v264_v22 = vpop.f32.mrf.mxu2  ;;  %v277_v23 = vpop.f32.mrf.mxu3 }
 0x13b   :  { %v348_v20 = vpop.f32.mrf.mxu0  ;;  %v361_v21 = vpop.f32.mrf.mxu1 }
 0x13c   :  { %v391_v31 = vadd.f32 %v348_v20, %v237_v19  ;;  %v392_v32 = vadd.f32 %v361_v21, %v250_v24 }
 0x142   :  { %v374_v33 = vpop.f32.mrf.mxu2  ;;  %v387_v34 = vpop.f32.mrf.mxu3 }
 0x143   :  { %v393_v35 = vadd.f32 %v374_v33, %v263_v27  ;;  %v394_v36 = vadd.f32 %v387_v34, %v276_v28  ;;  %v350_v37 = vpop.f32.mrf.mxu0  ;;  %v363_v38 = vpop.f32.mrf.mxu1 }
 0x14a   :  { %v376_v39 = vpop.f32.mrf.mxu2  ;;  %v389_v40 = vpop.f32.mrf.mxu3 }
 0x14b   :  { %v464_v41 = vpop.f32.mrf.mxu0  ;;  %v477_v44 = vpop.f32.mrf.mxu1 }
 0x14c   :  { %v507_v45 = vadd.f32 %v464_v41, %v391_v31  ;;  %v508_v46 = vadd.f32 %v477_v44, %v392_v32 }
 0x152   :  { %v490_v47 = vpop.f32.mrf.mxu2  ;;  %v503_v48 = vpop.f32.mrf.mxu3 }
 0x153   :  { %v509_v49 = vadd.f32 %v490_v47, %v393_v35  ;;  %v510_v50 = vadd.f32 %v503_v48, %v394_v36  ;;  %v466_v51 = vpop.f32.mrf.mxu0  ;;  %v479_v52 = vpop.f32.mrf.mxu1 }
 0x15a   :  { %v492_v54 = vpop.f32.mrf.mxu2  ;;  %v505_v53 = vpop.f32.mrf.mxu3 }
 0x15b   :  { %v552_v56 = vpop.f32.mrf.mxu0  ;;  %v565_v57 = vpop.f32.mrf.mxu1 }
 0x15c   :  { %v595_v19 = vadd.f32 %v552_v56, %v507_v45  ;;  %v596_v24 = vadd.f32 %v565_v57, %v508_v46 }
 0x162   :  { %v578_v58 = vpop.f32.mrf.mxu2  ;;  %v591_v59 = vpop.f32.mrf.mxu3 }
 0x163   :  { %v554_v60 = vpop.f32.mrf.mxu0  ;;  %v567_v61 = vpop.f32.mrf.mxu1  ;;  %v597_v22 = vadd.f32 %v578_v58, %v509_v49  ;;  %v598_v23 = vadd.f32 %v591_v59, %v510_v50 }
 0x16a   :  { %v580_v55 = vpop.f32.mrf.mxu2  ;;  %v593_v42 = vpop.f32.mrf.mxu3 }
 0x16b   :  { %v668_v62 = vpop.f32.mrf.mxu0  ;;  %v681_v63 = vpop.f32.mrf.mxu1 }
 0x16c   :  { %v711_v25 = vadd.f32 %v668_v62, %v595_v19  ;;  %v712_v26 = vadd.f32 %v681_v63, %v596_v24 }
 0x172   :  { %v694_v43 = vpop.f32.mrf.mxu2  ;;  %v707_v0 = vpop.f32.mrf.mxu3 }
 0x173   :  { %v670_v1 = vpop.f32.mrf.mxu0  ;;  %v683_v2 = vpop.f32.mrf.mxu1  ;;  %v713_v33 = vadd.f32 %v694_v43, %v597_v22  ;;  %v714_v34 = vadd.f32 %v707_v0, %v598_v23 }
 0x17a   :  { %v696_v3 = vpop.f32.mrf.mxu2  ;;  %v709_v4 = vpop.f32.mrf.mxu3 }
 0x17b   :  { %v784_v5 = vpop.f32.mrf.mxu0  ;;  %v797_v6 = vpop.f32.mrf.mxu1 }
 0x17c   :  { %v827_v27 = vadd.f32 %v784_v5, %v711_v25  ;;  %v828_v28 = vadd.f32 %v797_v6, %v712_v26  ;;  %v1114_v26 = vld [vmem:[%s1745_s4] sm:$0xf] }
 0x182   :  { %v810_v7 = vpop.f32.mrf.mxu2  ;;  %v823_v8 = vpop.f32.mrf.mxu3 }
 0x183   :  { %v786_v9 = vpop.f32.mrf.mxu0  ;;  %v799_v10 = vpop.f32.mrf.mxu1  ;;  %v829_v37 = vadd.f32 %v810_v7, %v713_v33  ;;  %v830_v38 = vadd.f32 %v823_v8, %v714_v34 }
 0x184   :  { %v1427_v9 = vmov 0  }
 0x185   :  { %1355 = vset.pattern.permute.xlu1 %v1427_v9  ;;  %1357 = vset.pattern.permute.xlu0 %v1427_v9 }
 0x186   :  { %1356 = vset.pattern.permute.xlu2 %v1427_v9 }
 0x18a   :  { %v812_v11 = vpop.f32.mrf.mxu2  ;;  %v825_v12 = vpop.f32.mrf.mxu3 }
 0x18b   :  { %v900_v13 = vpop.f32.mrf.mxu0  ;;  %v913_v14 = vpop.f32.mrf.mxu1 }
 0x18c   :  { %v943_v20 = vadd.f32 %v900_v13, %v827_v27  ;;  %v944_v21 = vadd.f32 %v913_v14, %v828_v28 }
 0x192   :  { %v926_v15 = vpop.f32.mrf.mxu2  ;;  %v939_v16 = vpop.f32.mrf.mxu3 }
 0x193   :  { %v902_v17 = vpop.f32.mrf.mxu0  ;;  %v915_v18 = vpop.f32.mrf.mxu1  ;;  %v945_v39 = vadd.f32 %v926_v15, %v829_v37  ;;  %v946_v40 = vadd.f32 %v939_v16, %v830_v38 }
 0x194   :  { %v1092_v18 = vld [vmem:[%s1744_s3] sm:$0xf] }
 0x19a   :  { %v928_v29 = vpop.f32.mrf.mxu2  ;;  %v941_v30 = vpop.f32.mrf.mxu3 }
 0x19b   :  { %v1016_v31 = vpop.f32.mrf.mxu0  ;;  %v1029_v32 = vpop.f32.mrf.mxu1 }
 0x19c   :  { %v1059_v35 = vadd.f32 %v1016_v31, %v943_v20  ;;  %v1060_v36 = vadd.f32 %v1029_v32, %v944_v21 }
 0x19e   :  { %v1064_v41 = vsel %vm1063_vm10, %v1059_v35, 0.0  ;;  %v1065_v44 = vsel %vm1063_vm10, %v1060_v36, 0.0 }
 0x19f   :  { %v1066_v51 = vadd.f32 %v1065_v44, %v1064_v41 }
 0x1a2   :  { %v1042_v45 = vpop.f32.mrf.mxu2  ;;  %v1055_v46 = vpop.f32.mrf.mxu3 }
 0x1a3   :  { %v1061_v47 = vadd.f32 %v1042_v45, %v945_v39  ;;  %v1062_v48 = vadd.f32 %v1055_v46, %v946_v40  ;;  %v1018_v49 = vpop.f32.mrf.mxu0  ;;  %v1031_v50 = vpop.f32.mrf.mxu1 }
 0x1a5   :  { %v1067_v52 = vsel %vm1063_vm10, %v1061_v47, 0.0  ;;  %v1069_v53 = vsel %vm1063_vm10, %v1062_v48, 0.0 }
 0x1a6   :  { %v1068_v54 = vadd.f32 %v1067_v52, %v1066_v51 }
 0x1a8   :  { %v1070_v56 = vadd.f32 %v1069_v53, %v1068_v54 }
 0x1aa   :  { %v1044_v57 = vpop.f32.mrf.mxu2  ;;  %v1057_v58 = vpop.f32.mrf.mxu3  ;;  %1071 = vadd.xlane.f32.xlu2 %v1070_v56 }
 0x21d   :  { %v1072_v59 = vpop.xlane.xlu2 %1071 }
 0x21e   :  { %v1073_v60 = vmul.f32 0.001953125, %v1072_v59 }
 0x220   :  { %v1074_v61 = vsub.f32 %v1059_v35, %v1073_v60  ;;  %v1075_v55 = vsub.f32 %v1060_v36, %v1073_v60  ;;  %v1076_v42 = vsub.f32 %v1061_v47, %v1073_v60  ;;  %v1077_v62 = vsub.f32 %v1062_v48, %v1073_v60  ;;  %v1128_v47 = vld [vmem:[%s1746_s5] sm:$0x3] }
 0x222   :  { %v1078_v63 = vmul.f32 %v1074_v61, %v1074_v61  ;;  %v1079_v43 = vmul.f32 %v1075_v55, %v1075_v55  ;;  %v1080_v0 = vmul.f32 %v1076_v42, %v1076_v42  ;;  %v1081_v1 = vmul.f32 %v1077_v62, %v1077_v62 }
 0x224   :  { %v1082_v2 = vsel %vm1063_vm10, %v1078_v63, 0.0  ;;  %v1083_v3 = vsel %vm1063_vm10, %v1079_v43, 0.0  ;;  %v1085_v5 = vsel %vm1063_vm10, %v1080_v0, 0.0  ;;  %v1087_v7 = vsel %vm1063_vm10, %v1081_v1, 0.0 }
 0x225   :  { %v1084_v4 = vadd.f32 %v1083_v3, %v1082_v2 }
 0x227   :  { %v1086_v6 = vadd.f32 %v1085_v5, %v1084_v4 }
 0x229   :  { %v1088_v8 = vadd.f32 %v1087_v7, %v1086_v6 }
 0x22b   :  { %1089 = vadd.xlane.f32.xlu0 %v1088_v8 }
 0x29e   :  { %v1090_v10 = vpop.xlane.xlu0 %1089 }
 0x29f   :  { %v1091_v11 = vmul.f32 0.001953125, %v1090_v10 }
 0x2a1   :  { %v1093_v12 = vadd.f32 1e-05, %v1091_v11 }
 0x2a3   :  { %1358 = vrsqrt.f32 %v1093_v12  ;;  %vm1100_vm12 = vweird.f32 %v1093_v12 }
 0x2a9   :  { %v1359_v13 = vpop.eup %1358 }
 0x2aa   :  { %v1095_v14 = vmul.f32 %v1359_v13, %v1093_v12  ;;  %vm1101_vm11 = vweird.f32 %v1359_v13 }
 0x2ab   :  { %vm1102_vm13 = vmor %vm1100_vm12, %vm1101_vm11 }
 0x2ac   :  { %v1096_v15 = vmul.f32 %v1359_v13, %v1095_v14  ;;  %v1262_v14 = vld [vmem:[%s1748_s7] sm:$0xf] }
 0x2ad   :  { %1265 = vperm.xlu0 %1357, %v1262_v14  }
 0x2ae   :  { %v1097_v16 = vmul.f32 0.5, %v1096_v15 }
 0x2b0   :  { %v1098_v17 = vsub.f32 1.5, %v1097_v16 }
 0x2b2   :  { %v1099_v19 = vmul.f32 %v1359_v13, %v1098_v17 }
 0x2b4   :  { %v1103_v24 = vsel %vm1102_vm13, %v1359_v13, %v1099_v19 }
 0x2b5   :  { %v1104_v25 = vmul.f32 %v1103_v24, %v1092_v18 }
 0x2b7   :  { %1107 = vperm.xlu1 %1355, %v1104_v25  }
 0x2bf   :  { %1117 = vperm.xlu1 %1355, %v1114_v26  }
 0x329   :  { %v1108_v27 = vpop.permute.xlu1 %1107 }
 0x32a   :  { %v1110_v28 = vmul.f32 %v1108_v27, %v1074_v61  ;;  %v1111_v29 = vmul.f32 %v1108_v27, %v1075_v55  ;;  %v1112_v30 = vmul.f32 %v1108_v27, %v1076_v42  ;;  %v1113_v22 = vmul.f32 %v1108_v27, %v1077_v62  ;;  %v1228_v27 = vld [vmem:[%s1747_s6] sm:$0xf] }
 0x331   :  { %v1118_v23 = vpop.permute.xlu1 %1117 }
 0x332   :  { %v1120_v20 = vadd.f32 %v1118_v23, %v1110_v28  ;;  %v1121_v21 = vadd.f32 %v1118_v23, %v1111_v29  ;;  %v1122_v31 = vadd.f32 %v1118_v23, %v1112_v30  ;;  %v1123_v32 = vadd.f32 %v1118_v23, %v1113_v22 }
 0x333   :  { %v1428_v22 = vmov 839922192  }
 0x334   :  { %v1124_v33 = vmax.f32 %v1120_v20, 0.0  ;;  %v1125_v34 = vmax.f32 %v1121_v21, 0.0  ;;  %v1126_v35 = vmax.f32 %v1122_v31, 0.0  ;;  %v1127_v36 = vmax.f32 %v1123_v32, 0.0 }
 0x335   :  { %v1268_v23 = vunpack.c.l.s4 %v1428_v22 }
 0x336   :  { %v1129_v37 = vpack.c.bf16 %v1124_v33, %v1124_v33  ;;  %v1130_v38 = vpack.c.bf16 %v1125_v34, %v1125_v34  ;;  %v1131_v39 = vpack.c.bf16 %v1126_v35, %v1126_v35  ;;  %v1132_v40 = vpack.c.bf16 %v1127_v36, %v1127_v36  ;;  %v1266_v33 = vpop.permute.xlu0 %1265 }
 0x337   :  { %v1269_v21 = vunpack.c.0.s8 %v1268_v23 }
 0x338   :  { %v1137_v41 = vsel %vm147_vm3, %v1129_v37, 0  ;;  %v1140_v44 = vsel %vm147_vm3, %v1130_v38, 0  ;;  %v1143_v45 = vsel %vm147_vm3, %v1131_v39, 0  ;;  %v1146_v46 = vsel %vm147_vm3, %v1132_v40, 0 }
 0x339   :  { %1155 = vmatpush.bf16.msrb.mxu0 %v1137_v41  ;;  %1168 = vmatpush.bf16.msrb.mxu1 %v1140_v44  ;;  %v1270_v38 = vperm.slane %v1266_v33, %v1269_v21  ;;  %v1362_v41 = vld [vmem:[%s1741_s0] sm:$0xff] }
 0x33a   :  { %1181 = vmatpush.bf16.msrb.mxu2 %v1143_v45  ;;  %1194 = vmatpush.bf16.msrb.mxu3 %v1146_v46  ;;  %v1363_v45 = vld [vmem:[%s1741_s0 + $0x8] sm:$0xff] }
 0x33c   :  { %1337 = vmatmul.msk.bf16.vlgmr.msrb.gmra.mxu0 %vm143_vm4, %v1128_v47  ;;  %1338 = vmatmul.msk.bf16.vlgmr.msrb.gmra.mxu1 %vm143_vm4, %v1128_v47 }
 0x33d   :  { %1339 = vmatmul.msk.bf16.vlgmr.msrb.gmra.mxu2 %vm143_vm4, %v1128_v47  ;;  %1340 = vmatmul.msk.bf16.vlgmr.msrb.gmra.mxu3 %vm143_vm4, %v1128_v47 }
 0x3b9   :  { %v1157_v48 = vpop.f32.mrf.mxu0  ;;  %v1170_v49 = vpop.f32.mrf.mxu1 }
 0x3ba   :  { %v1200_v50 = vsel %vm1063_vm10, %v1157_v48, 0.0  ;;  %v1201_v51 = vsel %vm1063_vm10, %v1170_v49, 0.0 }
 0x3bb   :  { %v1202_v52 = vadd.f32 %v1201_v51, %v1200_v50 }
 0x3c0   :  { %v1183_v54 = vpop.f32.mrf.mxu2  ;;  %v1196_v53 = vpop.f32.mrf.mxu3 }
 0x3c1   :  { %v1203_v56 = vsel %vm1063_vm10, %v1183_v54, 0.0  ;;  %v1205_v57 = vsel %vm1063_vm10, %v1196_v53, 0.0  ;;  %v1159_v58 = vpop.f32.mrf.mxu0  ;;  %v1172_v59 = vpop.f32.mrf.mxu1 }
 0x3c2   :  { %v1204_v60 = vadd.f32 %v1203_v56, %v1202_v52 }
 0x3c4   :  { %v1206_v61 = vadd.f32 %v1205_v57, %v1204_v60 }
 0x3c6   :  { %1207 = vadd.xlane.f32.xlu1 %v1206_v61 }
 0x3c8   :  { %v1185_v55 = vpop.f32.mrf.mxu2  ;;  %v1198_v42 = vpop.f32.mrf.mxu3 }
 0x439   :  { %v1208_v62 = vpop.xlane.xlu1 %1207 }
 0x43a   :  { %v1209_v63 = vmul.f32 0.001953125, %v1208_v62 }
 0x43c   :  { %v1210_v43 = vsub.f32 %v1157_v48, %v1209_v63  ;;  %v1211_v0 = vsub.f32 %v1170_v49, %v1209_v63  ;;  %v1212_v1 = vsub.f32 %v1183_v54, %v1209_v63  ;;  %v1213_v2 = vsub.f32 %v1196_v53, %v1209_v63 }
 0x43e   :  { %v1214_v3 = vmul.f32 %v1210_v43, %v1210_v43  ;;  %v1215_v4 = vmul.f32 %v1211_v0, %v1211_v0  ;;  %v1216_v5 = vmul.f32 %v1212_v1, %v1212_v1  ;;  %v1217_v6 = vmul.f32 %v1213_v2, %v1213_v2 }
 0x440   :  { %v1218_v7 = vsel %vm1063_vm10, %v1214_v3, 0.0  ;;  %v1219_v8 = vsel %vm1063_vm10, %v1215_v4, 0.0  ;;  %v1221_v10 = vsel %vm1063_vm10, %v1216_v5, 0.0  ;;  %v1223_v12 = vsel %vm1063_vm10, %v1217_v6, 0.0 }
 0x441   :  { %v1220_v9 = vadd.f32 %v1219_v8, %v1218_v7 }
 0x443   :  { %v1222_v11 = vadd.f32 %v1221_v10, %v1220_v9 }
 0x445   :  { %v1224_v13 = vadd.f32 %v1223_v12, %v1222_v11 }
 0x447   :  { %1225 = vadd.xlane.f32.xlu2 %v1224_v13 }
 0x4ba   :  { %v1226_v15 = vpop.xlane.xlu2 %1225 }
 0x4bb   :  { %v1227_v16 = vmul.f32 0.001953125, %v1226_v15 }
 0x4bd   :  { %v1229_v17 = vadd.f32 1e-05, %v1227_v16 }
 0x4bf   :  { %1360 = vrsqrt.f32 %v1229_v17  ;;  %vm1236_vm15 = vweird.f32 %v1229_v17 }
 0x4c5   :  { %v1361_v18 = vpop.eup %1360 }
 0x4c6   :  { %v1231_v19 = vmul.f32 %v1361_v18, %v1229_v17  ;;  %vm1237_vm14 = vweird.f32 %v1361_v18 }
 0x4c7   :  { %vm1238_vm0 = vmor %vm1236_vm15, %vm1237_vm14 }
 0x4c8   :  { %v1232_v24 = vmul.f32 %v1361_v18, %v1231_v19 }
 0x4ca   :  { %v1233_v25 = vmul.f32 0.5, %v1232_v24 }
 0x4cc   :  { %v1234_v26 = vsub.f32 1.5, %v1233_v25 }
 0x4ce   :  { %v1235_v28 = vmul.f32 %v1361_v18, %v1234_v26 }
 0x4d0   :  { %v1239_v29 = vsel %vm1238_vm0, %v1361_v18, %v1235_v28 }
 0x4d1   :  { %v1240_v30 = vmul.f32 %v1239_v29, %v1228_v27 }
 0x4d3   :  { %1243 = vperm.xlu2 %1356, %v1240_v30  }
 0x52d   :  { %v1244_v20 = vpop.permute.xlu2 %1243 }
 0x52e   :  { %v1247_v31 = vmul.f32 %v1244_v20, %v1211_v0  ;;  %v1249_v32 = vmul.f32 %v1244_v20, %v1213_v2  ;;  %v1246_v34 = vmul.f32 %v1244_v20, %v1210_v43  ;;  %v1248_v35 = vmul.f32 %v1244_v20, %v1212_v1 }
 0x530   :  { %v1254_v36 = vrot.slane %v1247_v31, 4  ;;  %v1255_v37 = vrot.slane %v1249_v32, 4 }
 0x532   :  { %v1256_v39 = vsel %vm1063_vm10, %v1246_v34, %v1254_v36  ;;  %v1257_v40 = vsel %vm1063_vm10, %v1248_v35, %v1255_v37 }
 0x533   :  { %v1260_v44 = vadd.f32 %v1362_v41, %v1256_v39  ;;  %v1261_v46 = vadd.f32 %v1363_v45, %v1257_v40 }
 0x535   :  { %v1272_v47 = vadd.f32 %v1270_v38, %v1260_v44  ;;  %v1273_v48 = vadd.f32 %v1270_v38, %v1261_v46 }
 0x537   :  { %1274 = vst [vmem:[#allocation5] sm:$0xff] %v1272_v47 }
 0x538   :  { %1275 = vst [vmem:[#allocation5 + $0x8] sm:$0xff] %v1273_v48 }
 0x539   :  { %1286 = dma.vmem_to_hbm [thread:$0]  %s1282_s27, 256, %s1284_s30, [#allocation4]  }
 0x53a   :  { %1414 = dma.done.wait [#allocation4], 256  }
 0x53b   :  { %1415 = vsyncadd [#allocation4], 4294967040 }
 0x53c   :  { %1291 = vsyncpa [#allocation3], 1 }
 0x53d   :  { %1292 = vsyncpa [#allocation4], 1 }

</bundles_post_ra>
